<compile_context>
chip_gen: v5e
topology: v5e:2x2
jax: 0.10.0
libtpu: 0.0.40
codegen_flags: <defaults>
</compile_context>

<pallas_src>
import functools

import jax
import jax.numpy as jnp
from jax.experimental import pallas as pl
from jax.experimental.pallas import tpu as pltpu


# ----------------------------------------------------------------------------
# The single fused kernel: conv(+bias) -> square -> pool -> log -> fc1/fc2/fc3
# ----------------------------------------------------------------------------
def _fused_kernel(a_ref, wc_ref, pool_ref, w1_ref, b1_ref, w2_ref, b2_ref,
                  w3_ref, b3_ref, feat_ref, cls_ref, rep_ref, *, bt):
    # a_ref:    (bt, CK+1, Tc)  im2col'd input, last row = ones (bias fold), time on lanes
    # wc_ref:   (F2, CK+1)      folded conv weight with bias column
    # pool_ref: (Tc, Tp)        constant avg-pool(2) matrix (hoisted to an operand)
    # w1_ref:   (F2, Tp, H)     fc1 weight pre-reshaped -> flatten is purely logical
    # b1..b3:   (1, H) / (H,R)/(1,R) / (H,NC)/(1,NC)
    # feat_ref: (bt, F2, Tp)    log-pooled features
    # cls_ref:  (1, bt, NC)     class logits
    # rep_ref:  (1, bt, R)      representation
    wc = wc_ref[...]
    pool = pool_ref[...]

    per_b = []
    for b in range(bt):                                   # static unroll, bt is small
        ab = a_ref[b]                                      # (CK+1, Tc)
        h = jnp.dot(wc, ab, preferred_element_type=jnp.float32)       # conv + bias
        hsq = h * h
        pooled = jnp.dot(hsq, pool, preferred_element_type=jnp.float32)  # (F2, Tp)
        # TODO(synk): clamp-before-log matches safe-log conventions; a plain
        # torch.log in the original would be unguarded for pooled < 1e-6.
        fb = jnp.log(jnp.maximum(pooled, 1e-6))
        feat_ref[b] = fb
        per_b.append(fb[:, None, :])                       # (F2, 1, Tp)

    feats = per_b[0] if bt == 1 else jnp.concatenate(per_b, axis=1)   # (F2, bt, Tp)

    # fc1 without materializing the (bt, 1860) flatten: batched (over F2) matmul
    # contracting Tp, then reduce over F2.  logits[b,h] = sum_f sum_p feat*W1.
    partial = jnp.einsum("fbp,fph->fbh", feats, w1_ref[...],
                         preferred_element_type=jnp.float32)           # (F2, bt, H)
    logits = jnp.sum(partial, axis=0) + b1_ref[...]                    # (bt, H)

    # PyTorch LeakyReLU default slope 0.01; applied only on the fc2 branch.
    lrelu = jnp.where(logits >= 0, logits, 0.01 * logits)
    rep_ref[0] = jnp.dot(lrelu, w2_ref[...],
                         preferred_element_type=jnp.float32) + b2_ref[...]
    cls_ref[0] = jnp.dot(logits, w3_ref[...],
                         preferred_element_type=jnp.float32) + b3_ref[...]


def _choose_bt(B, max_bt=8):
    """Largest batch tile <= max_bt that divides B and (when possible) keeps >=2 blocks."""
    cap = min(max_bt, max(1, B // 2))
    for bt in range(cap, 0, -1):
        if B % bt == 0:
            return bt
    return 1


def fused_generator_call(a, wc, pool, w1r, b1, w2, b2, w3, b3):
    B, CKp, Tc = a.shape
    F2 = wc.shape[0]
    Tp = pool.shape[1]
    H = w1r.shape[2]
    R = w2.shape[1]
    NC = w3.shape[1]
    bt = _choose_bt(B)
    G = B // bt

    flops = 2 * B * (F2 * CKp * Tc + F2 * Tc * Tp + F2 * Tp * H + H * R + H * NC)
    bytes_accessed = 4 * (a.size + wc.size + pool.size + w1r.size + b1.size
                          + w2.size + b2.size + w3.size + b3.size
                          + B * (F2 * Tp + NC + R))

    feats, cls, rep = pl.pallas_call(
        functools.partial(_fused_kernel, bt=bt),
        out_shape=(
            jax.ShapeDtypeStruct((B, F2, Tp), jnp.float32),
            jax.ShapeDtypeStruct((G, bt, NC), jnp.float32),
            jax.ShapeDtypeStruct((G, bt, R), jnp.float32),
        ),
        grid=(G,),
        in_specs=[
            pl.BlockSpec((bt, CKp, Tc), lambda i: (i, 0, 0)),
            pl.BlockSpec((F2, CKp), lambda i: (0, 0)),
            pl.BlockSpec((Tc, Tp), lambda i: (0, 0)),
            pl.BlockSpec((F2, Tp, H), lambda i: (0, 0, 0)),
            pl.BlockSpec((1, H), lambda i: (0, 0)),
            pl.BlockSpec((H, R), lambda i: (0, 0)),
            pl.BlockSpec((1, R), lambda i: (0, 0)),
            pl.BlockSpec((H, NC), lambda i: (0, 0)),
            pl.BlockSpec((1, NC), lambda i: (0, 0)),
        ],
        out_specs=(
            pl.BlockSpec((bt, F2, Tp), lambda i: (i, 0, 0)),
            pl.BlockSpec((1, bt, NC), lambda i: (i, 0, 0)),
            pl.BlockSpec((1, bt, R), lambda i: (i, 0, 0)),
        ),
        compiler_params=pltpu.CompilerParams(dimension_semantics=("parallel",)),
        cost_estimate=pl.CostEstimate(flops=flops, transcendentals=B * F2 * Tp,
                                      bytes_accessed=bytes_accessed),
    )(a, wc, pool, w1r, b1, w2, b2, w3, b3)
    return feats, cls.reshape(B, NC), rep.reshape(B, R)


# ----------------------------------------------------------------------------
# One-time weight prep (out of the per-call path)
# ----------------------------------------------------------------------------
def prepare_params(p):
    """Fold temporal+spatial conv (no nonlinearity between them) into one
    contraction, fold the bias into the matmul, pre-reshape w1, and build the
    constant avg-pool(2) matrix.  Call once; reuse the result across forwards."""
    F2, F1, C, _ = p["w_s"].shape
    Kt = p["w_t"].shape[-1]
    w_s2 = p["w_s"][:, :, :, 0]                                   # (F2, F1, C)
    w_t2 = p["w_t"][:, 0, 0, :]                                   # (F1, Kt)
    w_eff = jnp.einsum("fgc,gk->fck", w_s2, w_t2).reshape(F2, C * Kt)
    b_eff = p["b_s"] + jnp.einsum("fgc,g->f", w_s2, p["b_t"])
    wc = jnp.concatenate([w_eff, b_eff[:, None]], axis=1)          # (F2, C*Kt+1)

    H = p["w1"].shape[1]
    Tp = p["w1"].shape[0] // F2                                    # 1860 // 30 = 62
    Tc = 2 * Tp
    w1r = p["w1"].reshape(F2, Tp, H)                               # row f*Tp + p
    r = jnp.arange(Tc)[:, None]
    c = jnp.arange(Tp)[None, :]
    pool = jnp.where((r // 2) == c, 0.5, 0.0).astype(jnp.float32)  # (Tc, Tp)

    return {"wc": wc, "pool": pool, "w1r": w1r, "b1": p["b1"],
            "w2": p["w2"], "b2": p["b2"], "w3": p["w3"], "b3": p["b3"]}


def _im2col_aug(x, Kt, Tc):
    # x: (B, 1, C, T) -> (B, C*Kt + 1, Tc); a[b, c*Kt + k, t] = x[b, 0, c, t+k],
    # last row = 1.0 so the conv bias rides the same matmul.
    B, _, C, _ = x.shape
    xs = x[:, 0]                                                    # (B, C, T)
    cols = jnp.stack([xs[:, :, k:k + Tc] for k in range(Kt)], axis=2)  # (B,C,Kt,Tc)
    a = cols.reshape(B, C * Kt, Tc)
    return jnp.concatenate([a, jnp.ones((B, 1, Tc), x.dtype)], axis=1)


# ----------------------------------------------------------------------------
# Parameters & forward
# ----------------------------------------------------------------------------
def init_params(key, *, C=4, T=128, Kt=5, F1=30, F2=30, num_classes=3):
    Tc = T - Kt + 1
    feat_dim = F2 * 1 * (Tc // 2)
    assert feat_dim == 1860, f"feature dim {feat_dim} != 1860"
    ks = jax.random.split(key, 10)
    return {
        "w_t": 0.1 * jax.random.normal(ks[0], (F1, 1, 1, Kt), jnp.float32),
        "b_t": 0.1 * jax.random.normal(ks[1], (F1,), jnp.float32),
        "w_s": 0.1 * jax.random.normal(ks[2], (F2, F1, C, 1), jnp.float32),
        "b_s": 0.1 * jax.random.normal(ks[3], (F2,), jnp.float32),
        "w1": 0.05 * jax.random.normal(ks[4], (feat_dim, 64), jnp.float32),
        "b1": 0.05 * jax.random.normal(ks[5], (1, 64), jnp.float32),
        "w2": 0.05 * jax.random.normal(ks[6], (64, 16), jnp.float32),
        "b2": 0.05 * jax.random.normal(ks[7], (1, 16), jnp.float32),
        "w3": 0.05 * jax.random.normal(ks[8], (64, num_classes), jnp.float32),
        "b3": 0.05 * jax.random.normal(ks[9], (1, num_classes), jnp.float32),
    }


def generator_forward(prep, x):
    # ---- PMM ----
    # TODO(synk): PMM source was not provided; treated as identity, matching
    # `x, _, _, _ = self.pmm_module(x)` with the extra outputs unused.
    B, _, C, T = x.shape
    F2, CKp = prep["wc"].shape
    Kt = (CKp - 1) // C
    Tc, Tp = prep["pool"].shape
    assert T - Kt + 1 == Tc and Tc % 2 == 0

    a = _im2col_aug(x, Kt, Tc)                            # (B, C*Kt+1, Tc)
    feats, class_logits, representation = fused_generator_call(
        a, prep["wc"], prep["pool"], prep["w1r"], prep["b1"],
        prep["w2"], prep["b2"], prep["w3"], prep["b3"])
    features = feats[:, :, None, :]                       # (B, F2, 1, Tp)
    return features, class_logits, representation


# pure-jnp reference (unfused two-conv form) for a correctness check
def generator_forward_ref(params, x):
    B = x.shape[0]
    h = jax.lax.conv_general_dilated(x, params["w_t"], (1, 1), "VALID",
                                     dimension_numbers=("NCHW", "OIHW", "NCHW"))
    h = h + params["b_t"][None, :, None, None]
    h = jax.lax.conv_general_dilated(h, params["w_s"], (1, 1), "VALID",
                                     dimension_numbers=("NCHW", "OIHW", "NCHW"))
    h = h + params["b_s"][None, :, None, None]
    sq = h * h
    pooled = 0.5 * (sq[..., 0::2] + sq[..., 1::2])
    features = jnp.log(jnp.maximum(pooled, 1e-6))
    flat = features.reshape(B, -1)
    logits = flat @ params["w1"] + params["b1"]
    lr = jnp.where(logits >= 0, logits, 0.01 * logits)
    representation = lr @ params["w2"] + params["b2"]
    class_logits = logits @ params["w3"] + params["b3"]
    return features, class_logits, representation


if __name__ == "__main__":
    key = jax.random.PRNGKey(0)
    k_x, k_p = jax.random.split(key)

    B, C, T = 2, 4, 128
    x = jax.random.normal(k_x, (B, 1, C, T), jnp.float32)      # NCHW EEG input
    params = init_params(k_p, C=C, T=T, num_classes=3)
    prep = jax.tree_util.tree_map(jnp.asarray, prepare_params(params))  # one-time prep

    fwd = jax.jit(generator_forward)
    features, class_logits, representation = fwd(prep, x)
    jax.block_until_ready((features, class_logits, representation))

    assert features.shape == (B, 30, 1, 62)
    assert class_logits.shape == (B, 3)
    assert representation.shape == (B, 16)

    f_r, c_r, r_r = generator_forward_ref(params, x)
    assert jnp.allclose(features, f_r, atol=2e-3, rtol=2e-3)
    assert jnp.allclose(class_logits, c_r, atol=2e-3, rtol=2e-3)
    assert jnp.allclose(representation, r_r, atol=2e-3, rtol=2e-3)

    print("KERNEL_OK")
</pallas_src>

<mosaic_0001>
module attributes {stable_mosaic.version = 11 : i64} {
  func.func @_fused_kernel(%arg0: i32, %arg1: memref<1x21x124xf32, #tpu.memory_space<vmem>>, %arg2: memref<30x21xf32, #tpu.memory_space<vmem>>, %arg3: memref<124x62xf32, #tpu.memory_space<vmem>>, %arg4: memref<30x62x64xf32, #tpu.memory_space<vmem>>, %arg5: memref<1x64xf32, #tpu.memory_space<vmem>>, %arg6: memref<64x16xf32, #tpu.memory_space<vmem>>, %arg7: memref<1x16xf32, #tpu.memory_space<vmem>>, %arg8: memref<64x3xf32, #tpu.memory_space<vmem>>, %arg9: memref<1x3xf32, #tpu.memory_space<vmem>>, %arg10: memref<1x30x62xf32, #tpu.memory_space<vmem>>, %arg11: memref<1x1x3xf32, #tpu.memory_space<vmem>>, %arg12: memref<1x1x16xf32, #tpu.memory_space<vmem>>) attributes {dimension_semantics = [#tpu.dimension_semantics<parallel>], iteration_bounds = array<i64: 2>, scalar_prefetch = 0 : i64, scratch_operands = 0 : i64, tpu.core_type = #tpu.core_type<tc>, window_params = [{transform_indices = @transform_0, window_bounds = array<i64: 1, 21, 124>}, {pipeline_mode = #tpu.pipeline_mode<synchronous>, transform_indices = @transform_1, window_bounds = array<i64: 30, 21>}, {pipeline_mode = #tpu.pipeline_mode<synchronous>, transform_indices = @transform_2, window_bounds = array<i64: 124, 62>}, {pipeline_mode = #tpu.pipeline_mode<synchronous>, transform_indices = @transform_3, window_bounds = array<i64: 30, 62, 64>}, {pipeline_mode = #tpu.pipeline_mode<synchronous>, transform_indices = @transform_4, window_bounds = array<i64: 1, 64>}, {pipeline_mode = #tpu.pipeline_mode<synchronous>, transform_indices = @transform_5, window_bounds = array<i64: 64, 16>}, {pipeline_mode = #tpu.pipeline_mode<synchronous>, transform_indices = @transform_6, window_bounds = array<i64: 1, 16>}, {pipeline_mode = #tpu.pipeline_mode<synchronous>, transform_indices = @transform_7, window_bounds = array<i64: 64, 3>}, {pipeline_mode = #tpu.pipeline_mode<synchronous>, transform_indices = @transform_8, window_bounds = array<i64: 1, 3>}, {transform_indices = @transform_9, window_bounds = array<i64: 1, 30, 62>}, {transform_indices = @transform_10, window_bounds = array<i64: 1, 1, 3>}, {transform_indices = @transform_11, window_bounds = array<i64: 1, 1, 16>}]} {
    %c0 = arith.constant 0 : index
    %c0_0 = arith.constant 0 : index
    %0 = vector.load %arg2[%c0, %c0_0] : memref<30x21xf32, #tpu.memory_space<vmem>>, vector<30x21xf32>
    %c0_1 = arith.constant 0 : index
    %c0_2 = arith.constant 0 : index
    %1 = vector.load %arg3[%c0_1, %c0_2] : memref<124x62xf32, #tpu.memory_space<vmem>>, vector<124x62xf32>
    %c0_3 = arith.constant 0 : index
    %c0_4 = arith.constant 0 : index
    %c0_5 = arith.constant 0 : index
    %2 = vector.load %arg1[%c0_3, %c0_4, %c0_5] : memref<1x21x124xf32, #tpu.memory_space<vmem>>, vector<1x21x124xf32>
    %3 = vector.shape_cast %2 : vector<1x21x124xf32> to vector<21x124xf32>
    %cst = arith.constant dense<0.000000e+00> : vector<30x124xf32>
    %4 = tpu.matmul %0, %3, %cst {dimension_numbers = #tpu.dot_dimension_numbers<[1], [0], [0], [1], [0, 0, 1, 1], [], []>} : vector<30x21xf32>, vector<21x124xf32>, vector<30x124xf32> -> vector<30x124xf32>
    %5 = arith.mulf %4, %4 : vector<30x124xf32>
    %cst_6 = arith.constant dense<0.000000e+00> : vector<30x62xf32>
    %6 = tpu.matmul %5, %1, %cst_6 {dimension_numbers = #tpu.dot_dimension_numbers<[1], [0], [0], [1], [0, 0, 1, 1], [], []>} : vector<30x124xf32>, vector<124x62xf32>, vector<30x62xf32> -> vector<30x62xf32>
    %cst_7 = arith.constant 9.99999997E-7 : f32
    %7 = vector.broadcast %cst_7 : f32 to vector<30x62xf32>
    %8 = arith.maximumf %6, %7 : vector<30x62xf32>
    %9 = math.log %8 : vector<30x62xf32>
    %c0_8 = arith.constant 0 : index
    %c0_9 = arith.constant 0 : index
    %c0_10 = arith.constant 0 : index
    %10 = vector.load %arg10[%c0_8, %c0_9, %c0_10] : memref<1x30x62xf32, #tpu.memory_space<vmem>>, vector<1x30x62xf32>
    %11 = vector.shape_cast %10 : vector<1x30x62xf32> to vector<30x62xf32>
    %12 = vector.shape_cast %9 : vector<30x62xf32> to vector<1x30x62xf32>
    tpu.vector_store %arg10[%c0_8, %c0_9, %c0_10], %12 {strides = array<i32>} : memref<1x30x62xf32, #tpu.memory_space<vmem>>, vector<1x30x62xf32>,
    %13 = vector.shape_cast %9 : vector<30x62xf32> to vector<30x1x62xf32>
    %c0_11 = arith.constant 0 : index
    %c0_12 = arith.constant 0 : index
    %c0_13 = arith.constant 0 : index
    %14 = vector.load %arg4[%c0_11, %c0_12, %c0_13] : memref<30x62x64xf32, #tpu.memory_space<vmem>>, vector<30x62x64xf32>
    "tpu.trace_start"() <{level = 10 : i32, message = "fbp,fph->fbh"}> : () -> ()
    %cst_14 = arith.constant dense<0.000000e+00> : vector<30x1x64xf32>
    %15 = tpu.matmul %13, %14, %cst_14 {dimension_numbers = #tpu.dot_dimension_numbers<[2], [1], [1], [2], [0, 0, 0, 1, 1, 2], [0], [0]>} : vector<30x1x62xf32>, vector<30x62x64xf32>, vector<30x1x64xf32> -> vector<30x1x64xf32>
    "tpu.trace_stop"() : () -> ()
    %cst_15 = arith.constant dense<0.000000e+00> : vector<1x64xf32>
    %16 = vector.multi_reduction <add>, %15, %cst_15 [0] : vector<30x1x64xf32> to vector<1x64xf32>
    %c0_16 = arith.constant 0 : index
    %c0_17 = arith.constant 0 : index
    %17 = vector.load %arg5[%c0_16, %c0_17] : memref<1x64xf32, #tpu.memory_space<vmem>>, vector<1x64xf32>
    %18 = arith.addf %16, %17 : vector<1x64xf32>
    %cst_18 = arith.constant 0.000000e+00 : f32
    %19 = vector.broadcast %cst_18 : f32 to vector<1x64xf32>
    %20 = arith.cmpf oge, %18, %19 : vector<1x64xf32>
    %cst_19 = arith.constant 0.00999999977 : f32
    %21 = vector.broadcast %cst_19 : f32 to vector<1x64xf32>
    %22 = arith.mulf %21, %18 : vector<1x64xf32>
    %23 = arith.select %20, %18, %22 : vector<1x64xi1>, vector<1x64xf32>
    %c0_20 = arith.constant 0 : index
    %c0_21 = arith.constant 0 : index
    %24 = vector.load %arg6[%c0_20, %c0_21] : memref<64x16xf32, #tpu.memory_space<vmem>>, vector<64x16xf32>
    %cst_22 = arith.constant dense<0.000000e+00> : vector<1x16xf32>
    %25 = tpu.matmul %23, %24, %cst_22 {dimension_numbers = #tpu.dot_dimension_numbers<[1], [0], [0], [1], [0, 0, 1, 1], [], []>} : vector<1x64xf32>, vector<64x16xf32>, vector<1x16xf32> -> vector<1x16xf32>
    %c0_23 = arith.constant 0 : index
    %c0_24 = arith.constant 0 : index
    %26 = vector.load %arg7[%c0_23, %c0_24] : memref<1x16xf32, #tpu.memory_space<vmem>>, vector<1x16xf32>
    %27 = arith.addf %25, %26 : vector<1x16xf32>
    %c0_25 = arith.constant 0 : index
    %c0_26 = arith.constant 0 : index
    %c0_27 = arith.constant 0 : index
    %28 = vector.load %arg12[%c0_25, %c0_26, %c0_27] : memref<1x1x16xf32, #tpu.memory_space<vmem>>, vector<1x1x16xf32>
    %29 = vector.shape_cast %28 : vector<1x1x16xf32> to vector<1x16xf32>
    %30 = vector.shape_cast %27 : vector<1x16xf32> to vector<1x1x16xf32>
    tpu.vector_store %arg12[%c0_25, %c0_26, %c0_27], %30 {strides = array<i32>} : memref<1x1x16xf32, #tpu.memory_space<vmem>>, vector<1x1x16xf32>,
    %c0_28 = arith.constant 0 : index
    %c0_29 = arith.constant 0 : index
    %31 = vector.load %arg8[%c0_28, %c0_29] : memref<64x3xf32, #tpu.memory_space<vmem>>, vector<64x3xf32>
    %cst_30 = arith.constant dense<0.000000e+00> : vector<1x3xf32>
    %32 = tpu.matmul %18, %31, %cst_30 {dimension_numbers = #tpu.dot_dimension_numbers<[1], [0], [0], [1], [0, 0, 1, 1], [], []>} : vector<1x64xf32>, vector<64x3xf32>, vector<1x3xf32> -> vector<1x3xf32>
    %c0_31 = arith.constant 0 : index
    %c0_32 = arith.constant 0 : index
    %33 = vector.load %arg9[%c0_31, %c0_32] : memref<1x3xf32, #tpu.memory_space<vmem>>, vector<1x3xf32>
    %34 = arith.addf %32, %33 : vector<1x3xf32>
    %c0_33 = arith.constant 0 : index
    %c0_34 = arith.constant 0 : index
    %c0_35 = arith.constant 0 : index
    %35 = vector.load %arg11[%c0_33, %c0_34, %c0_35] : memref<1x1x3xf32, #tpu.memory_space<vmem>>, vector<1x1x3xf32>
    %36 = vector.shape_cast %35 : vector<1x1x3xf32> to vector<1x3xf32>
    %37 = vector.shape_cast %34 : vector<1x3xf32> to vector<1x1x3xf32>
    tpu.vector_store %arg11[%c0_33, %c0_34, %c0_35], %37 {strides = array<i32>} : memref<1x1x3xf32, #tpu.memory_space<vmem>>, vector<1x1x3xf32>,
    return
  }
  func.func @transform_0(%arg0: i32) -> (i32, i32, i32) {
    %c0_i32 = arith.constant 0 : i32
    %c0_i32_0 = arith.constant 0 : i32
    %c0_i32_1 = arith.constant 0 : i32
    return %arg0, %c0_i32, %c0_i32_0 : i32, i32, i32
  }
  func.func @transform_1(%arg0: i32) -> (i32, i32) {
    %c0_i32 = arith.constant 0 : i32
    %c0_i32_0 = arith.constant 0 : i32
    %c0_i32_1 = arith.constant 0 : i32
    return %c0_i32, %c0_i32_0 : i32, i32
  }
  func.func @transform_2(%arg0: i32) -> (i32, i32) {
    %c0_i32 = arith.constant 0 : i32
    %c0_i32_0 = arith.constant 0 : i32
    %c0_i32_1 = arith.constant 0 : i32
    return %c0_i32, %c0_i32_0 : i32, i32
  }
  func.func @transform_3(%arg0: i32) -> (i32, i32, i32) {
    %c0_i32 = arith.constant 0 : i32
    %c0_i32_0 = arith.constant 0 : i32
    %c0_i32_1 = arith.constant 0 : i32
    %c0_i32_2 = arith.constant 0 : i32
    return %c0_i32, %c0_i32_0, %c0_i32_1 : i32, i32, i32
  }
  func.func @transform_4(%arg0: i32) -> (i32, i32) {
    %c0_i32 = arith.constant 0 : i32
    %c0_i32_0 = arith.constant 0 : i32
    %c0_i32_1 = arith.constant 0 : i32
    return %c0_i32, %c0_i32_0 : i32, i32
  }
  func.func @transform_5(%arg0: i32) -> (i32, i32) {
    %c0_i32 = arith.constant 0 : i32
    %c0_i32_0 = arith.constant 0 : i32
    %c0_i32_1 = arith.constant 0 : i32
    return %c0_i32, %c0_i32_0 : i32, i32
  }
  func.func @transform_6(%arg0: i32) -> (i32, i32) {
    %c0_i32 = arith.constant 0 : i32
    %c0_i32_0 = arith.constant 0 : i32
    %c0_i32_1 = arith.constant 0 : i32
    return %c0_i32, %c0_i32_0 : i32, i32
  }
  func.func @transform_7(%arg0: i32) -> (i32, i32) {
    %c0_i32 = arith.constant 0 : i32
    %c0_i32_0 = arith.constant 0 : i32
    %c0_i32_1 = arith.constant 0 : i32
    return %c0_i32, %c0_i32_0 : i32, i32
  }
  func.func @transform_8(%arg0: i32) -> (i32, i32) {
    %c0_i32 = arith.constant 0 : i32
    %c0_i32_0 = arith.constant 0 : i32
    %c0_i32_1 = arith.constant 0 : i32
    return %c0_i32, %c0_i32_0 : i32, i32
  }
  func.func @transform_9(%arg0: i32) -> (i32, i32, i32) {
    %c0_i32 = arith.constant 0 : i32
    %c0_i32_0 = arith.constant 0 : i32
    %c0_i32_1 = arith.constant 0 : i32
    return %arg0, %c0_i32, %c0_i32_0 : i32, i32, i32
  }
  func.func @transform_10(%arg0: i32) -> (i32, i32, i32) {
    %c0_i32 = arith.constant 0 : i32
    %c0_i32_0 = arith.constant 0 : i32
    %c0_i32_1 = arith.constant 0 : i32
    return %arg0, %c0_i32, %c0_i32_0 : i32, i32, i32
  }
  func.func @transform_11(%arg0: i32) -> (i32, i32, i32) {
    %c0_i32 = arith.constant 0 : i32
    %c0_i32_0 = arith.constant 0 : i32
    %c0_i32_1 = arith.constant 0 : i32
    return %arg0, %c0_i32, %c0_i32_0 : i32, i32, i32
  }
}

</mosaic_0001>

<bundles_post_ra>
// kernel: generator_forward.1
= control target key start
LH: loop header
LB: loop body
LE: loop exit
PB: predicated region body
PF: predicated region fallthrough
CT: control target
= control target key end

     0   :  { %s2604_s0 = inlined_call_operand.vmem [shape: f32[2,21,124], index: 0, kind: input, shape index: {}]   ;;  %s2605_s1 = inlined_call_operand.vmem [shape: f32[30,21], index: 1, kind: input, shape index: {}]   ;;  %s2606_s2 = inlined_call_operand.vmem [shape: f32[124,62], index: 2, kind: input, shape index: {}]   ;;  %s2607_s3 = inlined_call_operand.hbm [shape: f32[30,62,64], index: 3, kind: input, shape index: {}]   ;;  %s2608_s4 = inlined_call_operand.vmem [shape: f32[1,64], index: 4, kind: input, shape index: {}]   ;;  %s2609_s5 = inlined_call_operand.vmem [shape: f32[64,16], index: 5, kind: input, shape index: {}]   ;;  %s2610_s6 = inlined_call_operand.vmem [shape: f32[1,16], index: 6, kind: input, shape index: {}]   ;;  %s2611_s7 = inlined_call_operand.vmem [shape: f32[64,3], index: 7, kind: input, shape index: {}]   ;;  %s2612_s8 = inlined_call_operand.vmem [shape: f32[1,3], index: 8, kind: input, shape index: {}]   ;;  %s2613_s9 = inlined_call_operand.vmem [shape: f32[2,30,62], index: 9, kind: output, shape index: {0}]   ;;  %s2614_s10 = inlined_call_operand.hbm [shape: f32[2,1,3], index: 10, kind: output, shape index: {1}]   ;;  %s2615_s11 = inlined_call_operand.hbm [shape: f32[2,1,16], index: 11, kind: output, shape index: {2}]  }
   0x1   :  { %2616 = sst [smem:[#allocation11_spill]] %s2604_s0 }
   0x2   :  { %2617 = sst [smem:[#allocation12_spill]] %s2605_s1 }
   0x3   :  { %2618 = sst [smem:[#allocation13_spill]] %s2606_s2 }
   0x4   :  { %2619 = sst [smem:[#allocation14_spill]] %s2607_s3 }
   0x5   :  { %2620 = sst [smem:[#allocation15_spill]] %s2608_s4 }
   0x6   :  { %17 = vsyncpa [#allocation3], 0 }
   0x7   :  { %18 = vsyncpa [#allocation4], 0 }
   0x8   :  { %20 = vsyncpa [#allocation4 + $0x1], 0 }
   0x9   :  { %21 = vsyncpa [#allocation7], 0 }
   0xa   :  { %23 = vsyncpa [#allocation7 + $0x1], 0  ;;  %s2216_s17 = smov 0   ;;  %s2218_s18 = smov 0  }
   0xb   :  { %s2220_s19 = smov 0   ;;  %s2222_s20 = smov 0  }
   0xc LB: > { %s2237_s21 = sadd.s32 4294967295, %s2151_s20   ;;  %s1873_s22 = sadd.s32 4294967294, %s2151_s20   ;;  %s2151_s20 = sphi %s2222_s20, %s2631_s20   ;;  %s2147_s19 = sphi %s2220_s19, %s2630_s19   ;;  %s2143_s18 = sphi %s2218_s18, %s2629_s18   ;;  %s2139_s17 = sphi %s2216_s17, %s2628_s17  }
   0xd   : > { %s2241_s23 = sadd.s32 1, %s2151_s20   ;;  %s256_s24 = sadd.s32 1, %s2147_s19 }
   0xe   : > { %s253_s25 = ssub.s32 %s2151_s20, %s2241_s23  ;;  %p266_p0 = scmp.ne.s32.totalorder %s2147_s19, %s2143_s18 }
   0xf   : > { %p254_p1 = scmp.eq.s32.totalorder %s253_s25, 0  ;;  %p267_p2 = scmp.eq.s32.totalorder %s2237_s21, 1 }
  0x10   : > { %p272_p3 = scmp.ne.s32.totalorder %s2143_s18, %s2139_s17  ;;  %p273_p4 = scmp.eq.s32.totalorder %s1873_s22, 1 }
  0x11   : > { %s2252_s26 = scalar_select %p254_p1, %s2147_s19, %s256_s24  }
  0x12   : > { %p2254_p5 = por %p267_p2, %p266_p0  ;;  %p2258_p6 = por %p273_p4, %p272_p3 }
  0x13   : > { %p1874_p7 = scmp.ge.s32.totalorder %s2151_s20, 1  ;;  %p306_p8 = scmp.lt.s32.totalorder %s2151_s20, 3 }
  0x14   : > { %p1977_p9 = scmp.eq.s32.totalorder %s2237_s21, 0  ;;  %s2623_s3 = sld [smem:[#allocation14_spill]] }
  0x15   : > { %p307_p10 = pnand %p1874_p7, %p306_p8  ;;  %s2153_s13 = smov [#allocation2]  }
  0x16   : > { %s325_s14 = sshll.u32 %s2153_s13, 4  ;;  %s2154_s15 = smov 128   ;;  %s326_s14 = int_to_ptr.vmem [resolvable:$true] %s325_s14 }
  0x17   : > { %p1966_p11 = pneg %p307_p10  ;;  %s2155_s16 = smov 8  }
  0x18   : > { %364 = sbr.rel (%p307_p10) target bundleno = 702 (0x2be), region = 56 }
  0x19   : > { %p1967_p12 = pnand %p1977_p9, %p1966_p11 }
  0x1a   : > { %s323_s12 = sshll.u32 %s2623_s3, 4  ;;  %s324_s12 = int_to_ptr.hbm [resolvable:$true] %s323_s12 }
  0x1b   : > { %1969 = dma.hbm_to_vmem [thread:$0]  (!%p1967_p12), %s324_s12, 30720, %s326_s14, [#allocation3], %s2154_s15, %s2154_s15, %s2155_s16  }
  0x1d   : > { %2126 = dma.done.wait (%p1977_p9), [#allocation3], 30720  }
  0x1e   : > { %2128 = vsyncadd (%p1977_p9), [#allocation3], 4294936576  ;;  %p413_p13 = scmp.lt.s32.totalorder %s2237_s21, 1  ;;  %vm459_vm0 = vcmask 1044480   ;;  %s2624_s0 = sld [smem:[#allocation11_spill]]  ;;  %vm509_vm1 = vcmask 1043456  }
  0x1f   : > { %s2625_s2 = sld [smem:[#allocation13_spill]]  ;;  %vm446_vm2 = vcmask 171008   ;;  %v597_v23 = vld [vmem:[#allocation2 + $0x38] sm:$0x3f]  ;;  %vm832_vm3 = vcmask 1045504   ;;  %v596_v24 = vld [vmem:[#allocation2 + $0x30] sm:$0xff]  ;;  %s1736_s25 = scalar_lea.hbm %s2614_s10, %s2237_s21 }
  0x20   : > { %s2276_s22 = scalar_select %p413_p13, %s2237_s21, 1  ;;  %v605_v25 = vld [vmem:[#allocation2 + $0x78] sm:$0x3f]  ;;  %1892 = vmatpush.msk.msra.mxu2 %vm832_vm3, %v597_v23  ;;  %v604_v26 = vld [vmem:[#allocation2 + $0x70] sm:$0xff]  ;;  %v595_v27 = vld [vmem:[#allocation2 + $0x28] sm:$0xff]  ;;  %vm496_vm4 = vcmask 1014784  }
  0x21   : > { %s2626_s1 = sld [smem:[#allocation12_spill]]  ;;  %1894 = vmatpush.msk.msra.mxu3 %vm832_vm3, %v605_v25  ;;  %v603_v28 = vld [vmem:[#allocation2 + $0x68] sm:$0xff]  ;;  %v629_v29 = vld [vmem:[#allocation2 + $0x138] sm:$0x3f]  ;;  %v594_v30 = vld [vmem:[#allocation2 + $0x20] sm:$0xff]  ;;  %vm554_vm5 = vcmask 506880   ;;  %s1749_s16 = scalar_lea.hbm %s2615_s11, %s2237_s21 }
  0x22   : > { %s1957_s24 = smul.u32 24, %s2276_s22  ;;  %845 = vmatpush.msra.mxu2 %v596_v24  ;;  %v602_v31 = vld [vmem:[#allocation2 + $0x60] sm:$0xff]  ;;  %v628_v32 = vld [vmem:[#allocation2 + $0x130] sm:$0xff]  ;;  %v627_v34 = vld [vmem:[#allocation2 + $0x128] sm:$0xff]  ;;  %s1956_s12 = sshll.u32 %s2276_s22, 5  ;;  %vm558_vm6 = vcmask 504832  }
  0x23   : > { %870 = vmatpush.msra.mxu3 %v604_v26  ;;  %v593_v36 = vld [vmem:[#allocation2 + $0x18] sm:$0xff]  ;;  %v626_v38 = vld [vmem:[#allocation2 + $0x120] sm:$0xff]  ;;  %v592_v39 = vld [vmem:[#allocation2 + $0x10] sm:$0xff]  ;;  %s2362_s14 = scalar_lea.vmem %s2613_s9, %s1956_s12  ;;  %vm1581_vm7 = vcmask 516096   ;;  %s2627_s4 = sld [smem:[#allocation15_spill]]  ;;  %vm1655_vm8 = vcmask 523264  }
  0x24   : > { %s417_s30 = scalar_lea.vmem %s2624_s0, %s1957_s24  ;;  %846 = vmatpush.msra.mxu2 %v595_v27  ;;  %v601_v37 = vld [vmem:[#allocation2 + $0x58] sm:$0xff]  ;;  %v600_v40 = vld [vmem:[#allocation2 + $0x50] sm:$0xff]  ;;  %v591_v41 = vld [vmem:[#allocation2 + $0x8] sm:$0xff]  ;;  %s2547_s15 = sand.u32 1, %s2143_s18   ;;  %vm1713_vm10 = vcmask 16384  }
  0x25   : > { %v445_v0 = vld [vmem:[%s417_s30 + $0x10] sm:$0x1f]  ;;  %v444_v1 = vld [vmem:[%s417_s30 + $0x8] sm:$0xff]  ;;  %v443_v2 = vld [vmem:[%s417_s30] sm:$0xff]  ;;  %871 = vmatpush.msra.mxu3 %v603_v28  ;;  %s406_s12 = scalar_lea.vmem [#allocation5], %s2547_s15  ;;  %s1740_s3 = sshll.u32 %s1736_s25, 4  ;;  %s1741_s3 = int_to_ptr.hbm [resolvable:$true] %s1740_s3 }
  0x26   : > { %1882 = vmatpush.msk.msra.mxu0 %vm459_vm0, %v445_v0  ;;  %v442_v3 = vld [vmem:[%s2625_s2 + $0x78] sm:$0xf]  ;;  %v441_v4 = vld [vmem:[%s2625_s2 + $0x70] sm:$0xff]  ;;  %v440_v6 = vld [vmem:[%s2625_s2 + $0x68] sm:$0xff]  ;;  %847 = vmatpush.msra.mxu2 %v594_v30  ;;  %s1738_s13 = sshll.u32 %s406_s12, 4  ;;  %s1721_s24 = scalar_lea.sflag [#allocation4], %s2547_s15  ;;  %s1739_s13 = int_to_ptr.vmem [resolvable:$true] %s1738_s13 }
  0x27   : > { %v423_v5 = vld [vmem:[%s2626_s1] sm:$0xff]  ;;  %1887 = vmatpush.msk.msra.mxu1 %vm509_vm1, %v442_v3  ;;  %v438_v8 = vld [vmem:[%s2625_s2 + $0x58] sm:$0xff]  ;;  %v437_v9 = vld [vmem:[%s2625_s2 + $0x50] sm:$0xff]  ;;  %872 = vmatpush.msra.mxu3 %v602_v31  ;;  %s2067_s0 = sshra.s32 %s1741_s3, 4  ;;  %s2073_s30 = scalar_lea.hbm %s2614_s10, 2  ;;  %s2068_s0 = int_to_ptr.hbm [resolvable:$true] %s2067_s0 }
  0x28   : > { %477 = vmatpush.msra.mxu0 %v444_v1  ;;  %v439_v7 = vld [vmem:[%s2625_s2 + $0x60] sm:$0xff]  ;;  %v424_v10 = vld [vmem:[%s2626_s1 + $0x8] sm:$0xff]  ;;  %v434_v13 = vld [vmem:[%s2625_s2 + $0x38] sm:$0xff]  ;;  %848 = vmatpush.msra.mxu2 %v593_v36  ;;  %p2074_p3 = scmp.lt.s32.totalorder %s2068_s0, %s2614_s10 }
  0x29   : > { %514 = vmatpush.msra.mxu1 %v441_v4  ;;  %v436_v11 = vld [vmem:[%s2625_s2 + $0x48] sm:$0xff]  ;;  %v435_v12 = vld [vmem:[%s2625_s2 + $0x40] sm:$0xff]  ;;  %v433_v14 = vld [vmem:[%s2625_s2 + $0x30] sm:$0xff]  ;;  %873 = vmatpush.msra.mxu3 %v601_v37 }
  0x2a   : > { %478 = vmatpush.msra.mxu0 %v443_v2  ;;  %v425_v15 = vld [vmem:[%s2626_s1 + $0x10] sm:$0xff]  ;;  %v432_v16 = vld [vmem:[%s2625_s2 + $0x28] sm:$0xff]  ;;  %v431_v17 = vld [vmem:[%s2625_s2 + $0x20] sm:$0xff]  ;;  %849 = vmatpush.msra.mxu2 %v592_v39 }
  0x2b   : > { %1883 = vmatmul.msk.f32.vlgmr.msra.gmra.mxu0 %vm446_vm2, %v423_v5  ;;  %515 = vmatpush.msra.mxu1 %v440_v6  ;;  %v430_v18 = vld [vmem:[%s2625_s2 + $0x18] sm:$0xff]  ;;  %v429_v19 = vld [vmem:[%s2625_s2 + $0x10] sm:$0xff]  ;;  %v428_v21 = vld [vmem:[%s2625_s2 + $0x8] sm:$0xff] }
  0x2c   : > { %v426_v20 = vld [vmem:[%s2626_s1 + $0x18] sm:$0x3f]  ;;  %v427_v22 = vld [vmem:[%s2625_s2] sm:$0xff]  ;;  %1900 = vmatpush.msk.msrb.mxu0 %vm832_vm3, %v629_v29  ;;  %v599_v42 = vld [vmem:[#allocation2 + $0x48] sm:$0xff]  ;;  %874 = vmatpush.msra.mxu3 %v600_v40  ;;  %s2069_s1 = scalar_lea.hbm %s2068_s0, 1 }
  0x2d   : > { %516 = vmatpush.msra.mxu1 %v439_v7  ;;  %v590_v43 = vld [vmem:[#allocation2] sm:$0xff]  ;;  %850 = vmatpush.msra.mxu2 %v591_v41  ;;  %v613_v46 = vld [vmem:[#allocation2 + $0xb8] sm:$0x3f]  ;;  %v612_v49 = vld [vmem:[#allocation2 + $0xb0] sm:$0xff]  ;;  %p2070_p0 = scmp.ne.s32.totalorder %s2068_s0, %s2069_s1  ;;  %p2075_p4 = scmp.lt.s32.totalorder %s2073_s30, %s2069_s1 }
  0x2e   : > { %945 = vmatpush.msrb.mxu0 %v628_v32  ;;  %v598_v44 = vld [vmem:[#allocation2 + $0x40] sm:$0xff]  ;;  %875 = vmatpush.msra.mxu3 %v599_v42  ;;  %v621_v48 = vld [vmem:[#allocation2 + $0xf8] sm:$0x3f]  ;;  %v611_v55 = vld [vmem:[#allocation2 + $0xa8] sm:$0xff] }
  0x2f   : > { %517 = vmatpush.msra.mxu1 %v438_v8  ;;  %851 = vmatpush.msra.mxu2 %v590_v43  ;;  %v625_v54 = vld [vmem:[#allocation2 + $0x118] sm:$0xff]  ;;  %v620_v56 = vld [vmem:[#allocation2 + $0xf0] sm:$0xff]  ;;  %v610_v58 = vld [vmem:[#allocation2 + $0xa0] sm:$0xff]  ;;  %p2071_p1 = pnand %p2070_p0, %p2254_p5  ;;  %p2076_p7 = por %p2075_p4, %p2074_p3 }
  0x30   : > { %946 = vmatpush.msrb.mxu0 %v627_v34  ;;  %876 = vmatpush.msra.mxu3 %v598_v44  ;;  %v624_v57 = vld [vmem:[#allocation2 + $0x110] sm:$0xff]  ;;  %v619_v59 = vld [vmem:[#allocation2 + $0xe8] sm:$0xff]  ;;  %v609_v61 = vld [vmem:[#allocation2 + $0x98] sm:$0xff] }
  0x31   : > { %518 = vmatpush.msra.mxu1 %v437_v9  ;;  %1896 = vmatpush.msk.msrb.mxu2 %vm832_vm3, %v613_v46  ;;  %v623_v60 = vld [vmem:[#allocation2 + $0x108] sm:$0xff]  ;;  %v618_v62 = vld [vmem:[#allocation2 + $0xe0] sm:$0xff]  ;;  %v608_v0 = vld [vmem:[#allocation2 + $0x90] sm:$0xff]  ;;  %p2072_p2 = pneg %p2071_p1 }
  0x32   : > { %947 = vmatpush.msrb.mxu0 %v626_v38  ;;  %1898 = vmatpush.msk.msrb.mxu3 %vm832_vm3, %v621_v48  ;;  %v622_v63 = vld [vmem:[#allocation2 + $0x100] sm:$0xff]  ;;  %v617_v1 = vld [vmem:[#allocation2 + $0xd8] sm:$0xff]  ;;  %v607_v3 = vld [vmem:[#allocation2 + $0x88] sm:$0xff] }
  0x33   : > { %1884 = vmatmul.msk.f32.gmra.mxu0 %vm446_vm2, %v424_v10  ;;  %519 = vmatpush.msra.mxu1 %v436_v11  ;;  %v653_v2 = vld [vmem:[#allocation2 + $0x1f8] sm:$0x3f]  ;;  %v616_v4 = vld [vmem:[#allocation2 + $0xd0] sm:$0xff]  ;;  %v606_v6 = vld [vmem:[#allocation2 + $0x80] sm:$0xff]  ;;  %p2077_p8 = pnand %p2076_p7, %p2072_p2 }
  0x34   : > { %895 = vmatpush.msrb.mxu2 %v612_v49  ;;  %948 = vmatpush.msrb.mxu0 %v625_v54  ;;  %v652_v5 = vld [vmem:[#allocation2 + $0x1f0] sm:$0xff]  ;;  %v615_v7 = vld [vmem:[#allocation2 + $0xc8] sm:$0xff]  ;;  %v614_v9 = vld [vmem:[#allocation2 + $0xc0] sm:$0xff] }
  0x35   : > { %520 = vmatpush.msra.mxu1 %v435_v12  ;;  %920 = vmatpush.msrb.mxu3 %v620_v56  ;;  %v651_v8 = vld [vmem:[#allocation2 + $0x1e8] sm:$0xff]  ;;  %v650_v10 = vld [vmem:[#allocation2 + $0x1e0] sm:$0xff]  ;;  %v649_v11 = vld [vmem:[#allocation2 + $0x1d8] sm:$0xff] }
  0x36   : > { %896 = vmatpush.msrb.mxu2 %v611_v55  ;;  %949 = vmatpush.msrb.mxu0 %v624_v57  ;;  %v648_v12 = vld [vmem:[#allocation2 + $0x1d0] sm:$0xff]  ;;  %v654_v23 = vld [vmem:[#allocation2 + $0x200] sm:$0xff]  ;;  %v693_v25 = vld [vmem:[#allocation2 + $0x338] sm:$0x3f] }
  0x37   : > { %521 = vmatpush.msra.mxu1 %v434_v13  ;;  %921 = vmatpush.msrb.mxu3 %v619_v59  ;;  %v647_v13 = vld [vmem:[#allocation2 + $0x1c8] sm:$0xff]  ;;  %v692_v26 = vld [vmem:[#allocation2 + $0x330] sm:$0xff]  ;;  %v690_v29 = vld [vmem:[#allocation2 + $0x320] sm:$0xff] }
  0x38   : > { %897 = vmatpush.msrb.mxu2 %v610_v58  ;;  %950 = vmatpush.msrb.mxu0 %v623_v60  ;;  %v691_v27 = vld [vmem:[#allocation2 + $0x328] sm:$0xff]  ;;  %v689_v34 = vld [vmem:[#allocation2 + $0x318] sm:$0xff]  ;;  %v636_v37 = vld [vmem:[#allocation2 + $0x170] sm:$0xff] }
  0x39   : > { %522 = vmatpush.msra.mxu1 %v433_v14  ;;  %922 = vmatpush.msrb.mxu3 %v618_v62  ;;  %v661_v14 = vld [vmem:[#allocation2 + $0x238] sm:$0x3f]  ;;  %v688_v40 = vld [vmem:[#allocation2 + $0x310] sm:$0xff]  ;;  %v635_v41 = vld [vmem:[#allocation2 + $0x168] sm:$0xff] }
  0x3a   : > { %898 = vmatpush.msrb.mxu2 %v609_v61  ;;  %951 = vmatpush.msrb.mxu0 %v622_v63  ;;  %v645_v38 = vld [vmem:[#allocation2 + $0x1b8] sm:$0x3f]  ;;  %v644_v42 = vld [vmem:[#allocation2 + $0x1b0] sm:$0xff]  ;;  %v687_v44 = vld [vmem:[#allocation2 + $0x308] sm:$0xff] }
  0x3b   : > { %1885 = vmatmul.msk.f32.gmra.mxu0 %vm446_vm2, %v425_v15  ;;  %523 = vmatpush.msra.mxu1 %v432_v16  ;;  %v646_v15 = vld [vmem:[#allocation2 + $0x1c0] sm:$0xff]  ;;  %v660_v16 = vld [vmem:[#allocation2 + $0x230] sm:$0xff]  ;;  %v685_v39 = vld [vmem:[#allocation2 + $0x2f8] sm:$0x3f] }
  0x3c   : > { %899 = vmatpush.msrb.mxu2 %v608_v0  ;;  %923 = vmatpush.msrb.mxu3 %v617_v1  ;;  %v684_v43 = vld [vmem:[#allocation2 + $0x2f0] sm:$0xff]  ;;  %v643_v46 = vld [vmem:[#allocation2 + $0x1a8] sm:$0xff]  ;;  %v641_v55 = vld [vmem:[#allocation2 + $0x198] sm:$0xff] }
  0x3d   : > { %524 = vmatpush.msra.mxu1 %v431_v17  ;;  %1906 = vmatpush.msk.msra.mxu0 %vm832_vm3, %v653_v2  ;;  %v659_v17 = vld [vmem:[#allocation2 + $0x228] sm:$0xff]  ;;  %v632_v54 = vld [vmem:[#allocation2 + $0x150] sm:$0xff]  ;;  %v682_v57 = vld [vmem:[#allocation2 + $0x2e0] sm:$0xff] }
  0x3e   : > { %900 = vmatpush.msrb.mxu2 %v607_v3  ;;  %924 = vmatpush.msrb.mxu3 %v616_v4  ;;  %v683_v48 = vld [vmem:[#allocation2 + $0x2e8] sm:$0xff]  ;;  %v640_v59 = vld [vmem:[#allocation2 + $0x190] sm:$0xff]  ;;  %v681_v60 = vld [vmem:[#allocation2 + $0x2d8] sm:$0xff] }
  0x3f   : > { %525 = vmatpush.msra.mxu1 %v430_v18  ;;  %1020 = vmatpush.msra.mxu0 %v652_v5  ;;  %v658_v18 = vld [vmem:[#allocation2 + $0x220] sm:$0xff]  ;;  %v631_v58 = vld [vmem:[#allocation2 + $0x148] sm:$0xff]  ;;  %v669_v0 = vld [vmem:[#allocation2 + $0x278] sm:$0x3f] }
  0x40   : > { %901 = vmatpush.msrb.mxu2 %v606_v6  ;;  %925 = vmatpush.msrb.mxu3 %v615_v7  ;;  %v686_v61 = vld [vmem:[#allocation2 + $0x300] sm:$0xff]  ;;  %v639_v63 = vld [vmem:[#allocation2 + $0x188] sm:$0xff]  ;;  %v680_v1 = vld [vmem:[#allocation2 + $0x2d0] sm:$0xff] }
  0x41   : > { %526 = vmatpush.msra.mxu1 %v429_v19  ;;  %1021 = vmatpush.msra.mxu0 %v651_v8  ;;  %v657_v19 = vld [vmem:[#allocation2 + $0x218] sm:$0xff]  ;;  %v630_v62 = vld [vmem:[#allocation2 + $0x140] sm:$0xff]  ;;  %v668_v5 = vld [vmem:[#allocation2 + $0x270] sm:$0xff] }
  0x42   : > { %926 = vmatpush.msrb.mxu3 %v614_v9  ;;  %v638_v2 = vld [vmem:[#allocation2 + $0x180] sm:$0xff]  ;;  %v677_v6 = vld [vmem:[#allocation2 + $0x2b8] sm:$0x3f]  ;;  %v679_v8 = vld [vmem:[#allocation2 + $0x2c8] sm:$0xff] }
  0x43   : > { %1886 = vmatmul.msk.f32.gmra.mxu0 %vm446_vm2, %v426_v20  ;;  %527 = vmatpush.msra.mxu1 %v428_v21  ;;  %v656_v20 = vld [vmem:[#allocation2 + $0x210] sm:$0xff]  ;;  %v655_v21 = vld [vmem:[#allocation2 + $0x208] sm:$0xff] }
  0x44   : > { %1022 = vmatpush.msra.mxu0 %v650_v10  ;;  %v667_v10 = vld [vmem:[#allocation2 + $0x268] sm:$0xff] }
  0x45   : > { %528 = vmatpush.msra.mxu1 %v427_v22 }
  0x46   : > { %1023 = vmatpush.msra.mxu0 %v649_v11  ;;  %v676_v11 = vld [vmem:[#allocation2 + $0x2b0] sm:$0xff] }
  0x47   : > { %1908 = vmatpush.msk.msrb.mxu1 %vm832_vm3, %v661_v14  ;;  %v666_v14 = vld [vmem:[#allocation2 + $0x260] sm:$0xff] }
  0x48   : > { %1024 = vmatpush.msra.mxu0 %v648_v12  ;;  %v678_v12 = vld [vmem:[#allocation2 + $0x2c0] sm:$0xff] }
  0x49   : > { %1045 = vmatpush.msrb.mxu1 %v660_v16  ;;  %v717_v16 = vld [vmem:[#allocation2 + $0x3f8] sm:$0x3f] }
  0x4a   : > { %1025 = vmatpush.msra.mxu0 %v647_v13  ;;  %v725_v13 = vld [vmem:[#allocation2 + $0x438] sm:$0x3f] }
  0x4b   : > { %1046 = vmatpush.msrb.mxu1 %v659_v17  ;;  %v724_v17 = vld [vmem:[#allocation2 + $0x430] sm:$0xff] }
  0x4c   : > { %1026 = vmatpush.msra.mxu0 %v646_v15  ;;  %v675_v15 = vld [vmem:[#allocation2 + $0x2a8] sm:$0xff] }
  0x4d   : > { %1047 = vmatpush.msrb.mxu1 %v658_v18  ;;  %v665_v18 = vld [vmem:[#allocation2 + $0x258] sm:$0xff] }
  0x4f   : > { %1048 = vmatpush.msrb.mxu1 %v657_v19  ;;  %v674_v19 = vld [vmem:[#allocation2 + $0x2a0] sm:$0xff] }
  0x51   : > { %1049 = vmatpush.msrb.mxu1 %v656_v20  ;;  %v716_v20 = vld [vmem:[#allocation2 + $0x3f0] sm:$0xff] }
  0x53   : > { %1050 = vmatpush.msrb.mxu1 %v655_v21  ;;  %v723_v21 = vld [vmem:[#allocation2 + $0x428] sm:$0xff] }
  0x55   : > { %1051 = vmatpush.msrb.mxu1 %v654_v23  ;;  %v664_v23 = vld [vmem:[#allocation2 + $0x250] sm:$0xff] }
  0xa8   : > { %v480_v33 = vpop.f32.mrf.mxu0 }
  0xa9   : > { %v492_v35 = vmul.f32 %v480_v33, %v480_v33  ;;  %v637_v33 = vld [vmem:[#allocation2 + $0x178] sm:$0x3f] }
  0xab   : > { %1888 = vmatmul.msk.f32.vlgmr.msra.gmra.mxu1 %vm496_vm4, %v492_v35 }
  0xac   : > { %1916 = vmatpush.msk.msra.mxu1 %vm832_vm3, %v693_v25 }
  0xae   : > { %1145 = vmatpush.msra.mxu1 %v692_v26  ;;  %v715_v26 = vld [vmem:[#allocation2 + $0x3e8] sm:$0xff] }
  0xb0   : > { %v483_v45 = vpop.f32.mrf.mxu0  ;;  %1146 = vmatpush.msra.mxu1 %v691_v27 }
  0xb1   : > { %v493_v47 = vmul.f32 %v483_v45, %v483_v45  ;;  %v634_v45 = vld [vmem:[#allocation2 + $0x160] sm:$0xff] }
  0xb2   : > { %1147 = vmatpush.msra.mxu1 %v690_v29  ;;  %v672_v29 = vld [vmem:[#allocation2 + $0x290] sm:$0xff] }
  0xb3   : > { %1889 = vmatmul.msk.f32.gmra.mxu1 %vm496_vm4, %v493_v47 }
  0xb4   : > { %1148 = vmatpush.msra.mxu1 %v689_v34 }
  0xb6   : > { %1149 = vmatpush.msra.mxu1 %v688_v40  ;;  %v700_v40 = vld [vmem:[#allocation2 + $0x370] sm:$0xff] }
  0xb8   : > { %v486_v50 = vpop.f32.mrf.mxu0  ;;  %1150 = vmatpush.msra.mxu1 %v687_v44  ;;  %v699_v44 = vld [vmem:[#allocation2 + $0x368] sm:$0xff] }
  0xb9   : > { %v494_v51 = vmul.f32 %v486_v50, %v486_v50  ;;  %v633_v50 = vld [vmem:[#allocation2 + $0x158] sm:$0xff] }
  0xba   : > { %1151 = vmatpush.msra.mxu1 %v686_v61  ;;  %v695_v61 = vld [vmem:[#allocation2 + $0x348] sm:$0xff] }
  0xbb   : > { %1890 = vmatmul.msk.f32.gmra.mxu1 %vm496_vm4, %v494_v51  ;;  %v642_v51 = vld [vmem:[#allocation2 + $0x1a0] sm:$0xff] }
  0xc0   : > { %v489_v52 = vpop.f32.mrf.mxu0 }
  0xc1   : > { %v495_v53 = vmul.f32 %v489_v52, %v489_v52 }
  0xc3   : > { %1891 = vmatmul.msk.f32.gmra.mxu1 %vm496_vm4, %v495_v53 }
 0x128   : > { %v530_v22 = vpop.f32.mrf.mxu1 }
 0x129   : > { %v542_v24 = vmax.f32 %v530_v22, 1e-06 }
 0x12b   : > { %2015 = vlog2.f32 %v542_v24  ;;  %v673_v24 = vld [vmem:[#allocation2 + $0x298] sm:$0xff] }
 0x130   : > { %v533_v28 = vpop.f32.mrf.mxu1 }
 0x131   : > { %v2016_v30 = vpop.eup %2015  ;;  %v543_v31 = vmax.f32 %v533_v28, 1e-06  ;;  %v663_v28 = vld [vmem:[#allocation2 + $0x248] sm:$0xff] }
 0x132   : > { %v2364_v32 = vmul.f32 0.6931472, %v2016_v30  ;;  %v714_v30 = vld [vmem:[#allocation2 + $0x3e0] sm:$0xff] }
 0x133   : > { %2017 = vlog2.f32 %v543_v31  ;;  %v722_v31 = vld [vmem:[#allocation2 + $0x420] sm:$0xff] }
 0x134   : > { %555 = vst.msk [vmem:[%s2362_s14] sm:$0xff] %vm554_vm5, %v2364_v32  ;;  %1893 = vmatmul.msk.f32.vlgmr.msra.gmra.mxu2 %vm554_vm5, %v2364_v32  ;;  %v564_v35 = vrot.slane %v2364_v32, 1  ;;  %v567_v36 = vrot.slane %v2364_v32, 4  ;;  %v565_v49 = vrot.slane %v2364_v32, 2  ;;  %v566_v53 = vrot.slane %v2364_v32, 3 }
 0x135   : > { %1902 = vmatpush.msk.msra.mxu2 %vm832_vm3, %v637_v33  ;;  %v570_v56 = vrot.slane %v2364_v32, 7  ;;  %v568_v4 = vrot.slane %v2364_v32, 5  ;;  %v569_v9 = vrot.slane %v2364_v32, 6  ;;  %v662_v32 = vld [vmem:[#allocation2 + $0x240] sm:$0xff]  ;;  %v671_v33 = vld [vmem:[#allocation2 + $0x288] sm:$0xff] }
 0x136   : > { %1895 = vmatmul.msk.f32.vlgmr.msra.gmra.mxu3 %vm554_vm5, %v564_v35  ;;  %1901 = vmatmul.msk.f32.vlgmr.msrb.gmra.mxu0 %vm554_vm5, %v567_v36  ;;  %v701_v36 = vld [vmem:[#allocation2 + $0x378] sm:$0x3f] }
 0x137   : > { %970 = vmatpush.msra.mxu2 %v636_v37  ;;  %1904 = vmatpush.msk.msra.mxu3 %vm832_vm3, %v645_v38  ;;  %v670_v37 = vld [vmem:[#allocation2 + $0x280] sm:$0xff] }
 0x138   : > { %1914 = vmatpush.msk.msrb.mxu0 %vm832_vm3, %v685_v39  ;;  %v536_v3 = vpop.f32.mrf.mxu1  ;;  %v713_v39 = vld [vmem:[#allocation2 + $0x3d8] sm:$0xff] }
 0x139   : > { %v2018_v47 = vpop.eup %2017  ;;  %971 = vmatpush.msra.mxu2 %v635_v41  ;;  %995 = vmatpush.msra.mxu3 %v644_v42  ;;  %v544_v7 = vmax.f32 %v536_v3, 1e-06  ;;  %v709_v41 = vld [vmem:[#allocation2 + $0x3b8] sm:$0x3f]  ;;  %v712_v42 = vld [vmem:[#allocation2 + $0x3d0] sm:$0xff] }
 0x13a   : > { %v2379_v52 = vmul.f32 0.6931472, %v2018_v47  ;;  %1120 = vmatpush.msrb.mxu0 %v684_v43  ;;  %v721_v43 = vld [vmem:[#allocation2 + $0x418] sm:$0xff]  ;;  %v720_v47 = vld [vmem:[#allocation2 + $0x410] sm:$0xff] }
 0x13b   : > { %972 = vmatpush.msra.mxu2 %v634_v45  ;;  %996 = vmatpush.msra.mxu3 %v643_v46  ;;  %2019 = vlog2.f32 %v544_v7  ;;  %v708_v45 = vld [vmem:[#allocation2 + $0x3b0] sm:$0xff]  ;;  %v711_v46 = vld [vmem:[#allocation2 + $0x3c8] sm:$0xff]  ;;  %v746_v7 = vld [vmem:[#allocation2 + $0x4e0] sm:$0xff] }
 0x13c   : > { %1897 = vmatmul.msk.f32.vlgmr.msrb.gmra.mxu2 %vm554_vm5, %v565_v49  ;;  %556 = vst.msk [vmem:[%s2362_s14 + $0x8] sm:$0xff] %vm554_vm5, %v2379_v52  ;;  %1121 = vmatpush.msrb.mxu0 %v683_v48  ;;  %v574_v25 = vrot.slane %v2379_v52, 4  ;;  %v571_v34 = vrot.slane %v2379_v52, 1  ;;  %v573_v35 = vrot.slane %v2379_v52, 3  ;;  %v572_v38 = vrot.slane %v2379_v52, 2  ;;  %v698_v48 = vld [vmem:[#allocation2 + $0x360] sm:$0xff] }
 0x13d   : > { %973 = vmatpush.msra.mxu2 %v633_v50  ;;  %997 = vmatpush.msra.mxu3 %v642_v51  ;;  %v707_v49 = vld [vmem:[#allocation2 + $0x3a8] sm:$0xff]  ;;  %v710_v50 = vld [vmem:[#allocation2 + $0x3c0] sm:$0xff]  ;;  %v575_v3 = vrot.slane %v2379_v52, 5 }
 0x13e   : > { %1899 = vmatmul.msk.f32.vlgmr.msrb.gmra.mxu3 %vm554_vm5, %v566_v53  ;;  %1907 = vmatmul.msk.f32.vlgmr.msra.gmra.mxu0 %vm554_vm5, %v570_v56  ;;  %v719_v51 = vld [vmem:[#allocation2 + $0x408] sm:$0xff]  ;;  %v697_v53 = vld [vmem:[#allocation2 + $0x358] sm:$0xff]  ;;  %v718_v56 = vld [vmem:[#allocation2 + $0x400] sm:$0xff] }
 0x13f   : > { %974 = vmatpush.msra.mxu2 %v632_v54  ;;  %998 = vmatpush.msra.mxu3 %v641_v55  ;;  %v706_v54 = vld [vmem:[#allocation2 + $0x3a0] sm:$0xff]  ;;  %v577_v55 = vrot.slane %v2379_v52, 7 }
 0x140   : > { %1122 = vmatpush.msrb.mxu0 %v682_v57  ;;  %1909 = vmatmul.msk.f32.vlgmr.msrb.gmra.mxu1 %vm554_vm5, %v2379_v52  ;;  %v696_v57 = vld [vmem:[#allocation2 + $0x350] sm:$0xff] }
 0x141   : > { %975 = vmatpush.msra.mxu2 %v631_v58  ;;  %999 = vmatpush.msra.mxu3 %v640_v59  ;;  %v2020_v22 = vpop.eup %2019  ;;  %v705_v58 = vld [vmem:[#allocation2 + $0x398] sm:$0xff] }
 0x142   : > { %1123 = vmatpush.msrb.mxu0 %v681_v60  ;;  %1924 = vmatpush.msk.msrb.mxu1 %vm832_vm3, %v725_v13  ;;  %v2400_v27 = vmul.f32 0.6931472, %v2020_v22  ;;  %v749_v59 = vld [vmem:[#allocation2 + $0x4f8] sm:$0x3f]  ;;  %v738_v22 = vld [vmem:[#allocation2 + $0x4a0] sm:$0xff] }
 0x143   : > { %976 = vmatpush.msra.mxu2 %v630_v62  ;;  %1000 = vmatpush.msra.mxu3 %v639_v63  ;;  %v757_v60 = vld [vmem:[#allocation2 + $0x538] sm:$0x3f]  ;;  %v704_v62 = vld [vmem:[#allocation2 + $0x390] sm:$0xff] }
 0x144   : > { %1124 = vmatpush.msrb.mxu0 %v680_v1  ;;  %1903 = vmatmul.msk.f32.vlgmr.msra.gmra.mxu2 %vm554_vm5, %v568_v4  ;;  %557 = vst.msk [vmem:[%s2362_s14 + $0x10] sm:$0xff] %vm554_vm5, %v2400_v27  ;;  %v748_v63 = vld [vmem:[#allocation2 + $0x4f0] sm:$0xff]  ;;  %v694_v1 = vld [vmem:[#allocation2 + $0x340] sm:$0xff]  ;;  %v747_v4 = vld [vmem:[#allocation2 + $0x4e8] sm:$0xff] }
 0x145   : > { %1910 = vmatpush.msk.msrb.mxu2 %vm832_vm3, %v669_v0  ;;  %1001 = vmatpush.msra.mxu3 %v638_v2  ;;  %v756_v0 = vld [vmem:[#allocation2 + $0x530] sm:$0xff]  ;;  %v703_v2 = vld [vmem:[#allocation2 + $0x388] sm:$0xff]  ;;  %v745_v13 = vld [vmem:[#allocation2 + $0x4d8] sm:$0xff] }
 0x146   : > { %1905 = vmatmul.msk.f32.vlgmr.msra.gmra.mxu3 %vm554_vm5, %v569_v9  ;;  %1125 = vmatpush.msrb.mxu0 %v679_v8  ;;  %v539_v8 = vpop.f32.mrf.mxu1  ;;  %v576_v9 = vrot.slane %v2379_v52, 6  ;;  %v730_v52 = vld [vmem:[#allocation2 + $0x460] sm:$0xff] }
 0x147   : > { %1070 = vmatpush.msrb.mxu2 %v668_v5  ;;  %1912 = vmatpush.msk.msrb.mxu3 %vm832_vm3, %v677_v6  ;;  %v733_v5 = vld [vmem:[#allocation2 + $0x478] sm:$0x3f]  ;;  %v702_v6 = vld [vmem:[#allocation2 + $0x380] sm:$0xff] }
 0x148   : > { %1126 = vmatpush.msrb.mxu0 %v678_v12  ;;  %1245 = vmatpush.msrb.mxu1 %v724_v17  ;;  %v545_v12 = vmax.f32 %v539_v8, 1e-06  ;;  %v744_v17 = vld [vmem:[#allocation2 + $0x4d0] sm:$0xff]  ;;  %v584_v8 = vrot.slane %v2400_v27, 7 }
 0x149   : > { %1071 = vmatpush.msrb.mxu2 %v667_v10  ;;  %1095 = vmatpush.msrb.mxu3 %v676_v11  ;;  %v732_v10 = vld [vmem:[#allocation2 + $0x470] sm:$0xff]  ;;  %v741_v11 = vld [vmem:[#allocation2 + $0x4b8] sm:$0x3f] }
 0x14a   : > { %1922 = vmatpush.msk.msra.mxu0 %vm832_vm3, %v717_v16  ;;  %1246 = vmatpush.msrb.mxu1 %v723_v21  ;;  %v740_v16 = vld [vmem:[#allocation2 + $0x4b0] sm:$0xff]  ;;  %2021 = vlog2.f32 %v545_v12  ;;  %v729_v21 = vld [vmem:[#allocation2 + $0x458] sm:$0xff]  ;;  %v583_v12 = vrot.slane %v2400_v27, 6 }
 0x14b   : > { %1072 = vmatpush.msrb.mxu2 %v666_v14  ;;  %1096 = vmatpush.msrb.mxu3 %v675_v15  ;;  %v755_v14 = vld [vmem:[#allocation2 + $0x528] sm:$0xff] }
 0x14c   : > { %1220 = vmatpush.msra.mxu0 %v716_v20  ;;  %1917 = vmatmul.msk.f32.vlgmr.msra.gmra.mxu1 %vm554_vm5, %v574_v25  ;;  %v731_v15 = vld [vmem:[#allocation2 + $0x468] sm:$0xff]  ;;  %v754_v20 = vld [vmem:[#allocation2 + $0x520] sm:$0xff] }
 0x14d   : > { %1073 = vmatpush.msrb.mxu2 %v665_v18  ;;  %1097 = vmatpush.msrb.mxu3 %v674_v19  ;;  %v739_v18 = vld [vmem:[#allocation2 + $0x4a8] sm:$0xff] }
 0x14e   : > { %1221 = vmatpush.msra.mxu0 %v715_v26  ;;  %1247 = vmatpush.msrb.mxu1 %v722_v31  ;;  %v743_v19 = vld [vmem:[#allocation2 + $0x4c8] sm:$0xff]  ;;  %v728_v26 = vld [vmem:[#allocation2 + $0x450] sm:$0xff] }
 0x14f   : > { %1074 = vmatpush.msrb.mxu2 %v664_v23  ;;  %1098 = vmatpush.msrb.mxu3 %v673_v24  ;;  %v742_v23 = vld [vmem:[#allocation2 + $0x4c0] sm:$0xff]  ;;  %v753_v24 = vld [vmem:[#allocation2 + $0x518] sm:$0xff] }
 0x150   : > { %1222 = vmatpush.msra.mxu0 %v714_v30  ;;  %1248 = vmatpush.msrb.mxu1 %v721_v43  ;;  %v2022_v25 = vpop.eup %2021  ;;  %v752_v30 = vld [vmem:[#allocation2 + $0x510] sm:$0xff]  ;;  %v750_v43 = vld [vmem:[#allocation2 + $0x500] sm:$0xff] }
 0x151   : > { %1075 = vmatpush.msrb.mxu2 %v663_v28  ;;  %1099 = vmatpush.msrb.mxu3 %v672_v29  ;;  %v737_v28 = vld [vmem:[#allocation2 + $0x498] sm:$0xff]  ;;  %v2426_v31 = vmul.f32 0.6931472, %v2022_v25  ;;  %v820_v25 = vld [vmem:[#allocation2 + $0x730] sm:$0xff] }
 0x152   : > { %1915 = vmatmul.msk.f32.vlgmr.msrb.gmra.mxu0 %vm554_vm5, %v573_v35  ;;  %1249 = vmatpush.msrb.mxu1 %v720_v47  ;;  %v781_v29 = vld [vmem:[#allocation2 + $0x5f8] sm:$0x3f]  ;;  %v751_v35 = vld [vmem:[#allocation2 + $0x508] sm:$0xff] }
 0x153   : > { %1076 = vmatpush.msrb.mxu2 %v662_v32  ;;  %1100 = vmatpush.msrb.mxu3 %v671_v33  ;;  %v727_v32 = vld [vmem:[#allocation2 + $0x448] sm:$0xff]  ;;  %v736_v33 = vld [vmem:[#allocation2 + $0x490] sm:$0xff]  ;;  %559 = vst.msk [vmem:[%s2362_s14 + $0x18] sm:$0x3f] %vm558_vm6, %v2426_v31  ;;  %v789_v47 = vld [vmem:[#allocation2 + $0x638] sm:$0x3f] }
 0x154   : > { %1911 = vmatmul.msk.f32.vlgmr.msrb.gmra.mxu2 %vm554_vm5, %v571_v34  ;;  %1223 = vmatpush.msra.mxu0 %v713_v39  ;;  %v780_v34 = vld [vmem:[#allocation2 + $0x5f0] sm:$0xff]  ;;  %v779_v39 = vld [vmem:[#allocation2 + $0x5e8] sm:$0xff] }
 0x155   : > { %1918 = vmatpush.msk.msra.mxu2 %vm832_vm3, %v701_v36  ;;  %1101 = vmatpush.msrb.mxu3 %v670_v37  ;;  %v726_v36 = vld [vmem:[#allocation2 + $0x440] sm:$0xff]  ;;  %v735_v37 = vld [vmem:[#allocation2 + $0x488] sm:$0xff] }
 0x156   : > { %1913 = vmatmul.msk.f32.vlgmr.msrb.gmra.mxu3 %vm554_vm5, %v572_v38  ;;  %1224 = vmatpush.msra.mxu0 %v712_v42  ;;  %v578_v38 = vrot.slane %v2400_v27, 1  ;;  %v579_v42 = vrot.slane %v2400_v27, 2 }
 0x157   : > { %1170 = vmatpush.msra.mxu2 %v700_v40  ;;  %1920 = vmatpush.msk.msra.mxu3 %vm832_vm3, %v709_v41  ;;  %v765_v40 = vld [vmem:[#allocation2 + $0x578] sm:$0x3f]  ;;  %v734_v41 = vld [vmem:[#allocation2 + $0x480] sm:$0xff] }
 0x158   : > { %1225 = vmatpush.msra.mxu0 %v711_v46  ;;  %1250 = vmatpush.msrb.mxu1 %v719_v51  ;;  %v778_v46 = vld [vmem:[#allocation2 + $0x5e0] sm:$0xff]  ;;  %v788_v51 = vld [vmem:[#allocation2 + $0x630] sm:$0xff] }
 0x159   : > { %1171 = vmatpush.msra.mxu2 %v699_v44  ;;  %1195 = vmatpush.msra.mxu3 %v708_v45  ;;  %v764_v44 = vld [vmem:[#allocation2 + $0x570] sm:$0xff]  ;;  %v773_v45 = vld [vmem:[#allocation2 + $0x5b8] sm:$0x3f] }
 0x15a   : > { %1226 = vmatpush.msra.mxu0 %v710_v50  ;;  %1251 = vmatpush.msrb.mxu1 %v718_v56  ;;  %v580_v50 = vrot.slane %v2400_v27, 3  ;;  %v787_v56 = vld [vmem:[#allocation2 + $0x628] sm:$0xff] }
 0x15b   : > { %1172 = vmatpush.msra.mxu2 %v698_v48  ;;  %1196 = vmatpush.msra.mxu3 %v707_v49  ;;  %v763_v48 = vld [vmem:[#allocation2 + $0x568] sm:$0xff]  ;;  %v772_v49 = vld [vmem:[#allocation2 + $0x5b0] sm:$0xff] }
 0x15c   : > { %1923 = vmatmul.msk.f32.vlgmr.msra.gmra.mxu0 %vm554_vm5, %v577_v55  ;;  %1932 = vmatpush.msk.msra.mxu1 %vm832_vm3, %v757_v60  ;;  %v777_v55 = vld [vmem:[#allocation2 + $0x5d8] sm:$0xff]  ;;  %v776_v60 = vld [vmem:[#allocation2 + $0x5d0] sm:$0xff] }
 0x15d   : > { %1173 = vmatpush.msra.mxu2 %v697_v53  ;;  %1197 = vmatpush.msra.mxu3 %v706_v54  ;;  %v762_v53 = vld [vmem:[#allocation2 + $0x560] sm:$0xff]  ;;  %v771_v54 = vld [vmem:[#allocation2 + $0x5a8] sm:$0xff] }
 0x15e   : > { %1930 = vmatpush.msk.msrb.mxu0 %vm832_vm3, %v749_v59  ;;  %1345 = vmatpush.msra.mxu1 %v756_v0  ;;  %v581_v59 = vrot.slane %v2400_v27, 4  ;;  %v786_v0 = vld [vmem:[#allocation2 + $0x620] sm:$0xff] }
 0x15f   : > { %1174 = vmatpush.msra.mxu2 %v696_v57  ;;  %1198 = vmatpush.msra.mxu3 %v705_v58  ;;  %v761_v57 = vld [vmem:[#allocation2 + $0x558] sm:$0xff]  ;;  %v770_v58 = vld [vmem:[#allocation2 + $0x5a0] sm:$0xff] }
 0x160   : > { %1320 = vmatpush.msrb.mxu0 %v748_v63  ;;  %1346 = vmatpush.msra.mxu1 %v755_v14  ;;  %v775_v63 = vld [vmem:[#allocation2 + $0x5c8] sm:$0xff]  ;;  %v805_v14 = vld [vmem:[#allocation2 + $0x6b8] sm:$0x3f] }
 0x161   : > { %1175 = vmatpush.msra.mxu2 %v695_v61  ;;  %1199 = vmatpush.msra.mxu3 %v704_v62  ;;  %v760_v61 = vld [vmem:[#allocation2 + $0x550] sm:$0xff]  ;;  %v769_v62 = vld [vmem:[#allocation2 + $0x598] sm:$0xff] }
 0x162   : > { %1321 = vmatpush.msrb.mxu0 %v747_v4  ;;  %1925 = vmatmul.msk.f32.vlgmr.msrb.gmra.mxu1 %vm554_vm5, %v2400_v27  ;;  %v785_v4 = vld [vmem:[#allocation2 + $0x618] sm:$0xff] }
 0x163   : > { %1176 = vmatpush.msra.mxu2 %v694_v1  ;;  %1200 = vmatpush.msra.mxu3 %v703_v2  ;;  %v759_v1 = vld [vmem:[#allocation2 + $0x548] sm:$0xff]  ;;  %v768_v2 = vld [vmem:[#allocation2 + $0x590] sm:$0xff] }
 0x164   : > { %1919 = vmatmul.msk.f32.vlgmr.msra.gmra.mxu2 %vm554_vm5, %v575_v3  ;;  %1322 = vmatpush.msrb.mxu0 %v746_v7  ;;  %v774_v3 = vld [vmem:[#allocation2 + $0x5c0] sm:$0xff]  ;;  %v582_v7 = vrot.slane %v2400_v27, 5  ;;  %v803_v27 = vld [vmem:[#allocation2 + $0x6a8] sm:$0xff] }
 0x165   : > { %1926 = vmatpush.msk.msrb.mxu2 %vm832_vm3, %v733_v5  ;;  %1201 = vmatpush.msra.mxu3 %v702_v6  ;;  %v758_v5 = vld [vmem:[#allocation2 + $0x540] sm:$0xff]  ;;  %v767_v6 = vld [vmem:[#allocation2 + $0x588] sm:$0xff] }
 0x166   : > { %1921 = vmatmul.msk.f32.vlgmr.msra.gmra.mxu3 %vm554_vm5, %v576_v9  ;;  %1323 = vmatpush.msrb.mxu0 %v745_v13  ;;  %v797_v9 = vld [vmem:[#allocation2 + $0x678] sm:$0x3f]  ;;  %v796_v13 = vld [vmem:[#allocation2 + $0x670] sm:$0xff] }
 0x167   : > { %1270 = vmatpush.msrb.mxu2 %v732_v10  ;;  %1928 = vmatpush.msk.msrb.mxu3 %vm832_vm3, %v741_v11  ;;  %v766_v10 = vld [vmem:[#allocation2 + $0x580] sm:$0xff]  ;;  %v784_v11 = vld [vmem:[#allocation2 + $0x610] sm:$0xff] }
 0x168   : > { %1324 = vmatpush.msrb.mxu0 %v744_v17  ;;  %1347 = vmatpush.msra.mxu1 %v754_v20  ;;  %v795_v17 = vld [vmem:[#allocation2 + $0x668] sm:$0xff]  ;;  %v794_v20 = vld [vmem:[#allocation2 + $0x660] sm:$0xff] }
 0x169   : > { %1271 = vmatpush.msrb.mxu2 %v731_v15  ;;  %1295 = vmatpush.msrb.mxu3 %v740_v16  ;;  %v783_v15 = vld [vmem:[#allocation2 + $0x608] sm:$0xff]  ;;  %v813_v16 = vld [vmem:[#allocation2 + $0x6f8] sm:$0x3f] }
 0x16a   : > { %1325 = vmatpush.msrb.mxu0 %v743_v19  ;;  %1348 = vmatpush.msra.mxu1 %v753_v24  ;;  %v812_v19 = vld [vmem:[#allocation2 + $0x6f0] sm:$0xff]  ;;  %v802_v24 = vld [vmem:[#allocation2 + $0x6a0] sm:$0xff] }
 0x16b   : > { %1272 = vmatpush.msrb.mxu2 %v730_v52  ;;  %1296 = vmatpush.msrb.mxu3 %v739_v18  ;;  %v804_v52 = vld [vmem:[#allocation2 + $0x6b0] sm:$0xff]  ;;  %v782_v18 = vld [vmem:[#allocation2 + $0x600] sm:$0xff] }
 0x16c   : > { %1326 = vmatpush.msrb.mxu0 %v742_v23  ;;  %1349 = vmatpush.msra.mxu1 %v752_v30  ;;  %v793_v23 = vld [vmem:[#allocation2 + $0x658] sm:$0xff]  ;;  %v819_v30 = vld [vmem:[#allocation2 + $0x728] sm:$0xff] }
 0x16d   : > { %1273 = vmatpush.msrb.mxu2 %v729_v21  ;;  %1297 = vmatpush.msrb.mxu3 %v738_v22  ;;  %v821_v21 = vld [vmem:[#allocation2 + $0x738] sm:$0x3f]  ;;  %v811_v22 = vld [vmem:[#allocation2 + $0x6e8] sm:$0xff] }
 0x16e   : > { %1938 = vmatpush.msk.msra.mxu0 %vm832_vm3, %v781_v29  ;;  %1350 = vmatpush.msra.mxu1 %v751_v35  ;;  %v801_v29 = vld [vmem:[#allocation2 + $0x698] sm:$0xff]  ;;  %v818_v35 = vld [vmem:[#allocation2 + $0x720] sm:$0xff] }
 0x16f   : > { %1274 = vmatpush.msrb.mxu2 %v728_v26  ;;  %1298 = vmatpush.msrb.mxu3 %v737_v28  ;;  %v810_v26 = vld [vmem:[#allocation2 + $0x6e0] sm:$0xff]  ;;  %v792_v28 = vld [vmem:[#allocation2 + $0x650] sm:$0xff] }
 0x170   : > { %1420 = vmatpush.msra.mxu0 %v780_v34  ;;  %1351 = vmatpush.msra.mxu1 %v750_v43  ;;  %v800_v34 = vld [vmem:[#allocation2 + $0x690] sm:$0xff]  ;;  %v586_v43 = vrot.slane %v2426_v31, 2 }
 0x171   : > { %1275 = vmatpush.msrb.mxu2 %v727_v32  ;;  %1299 = vmatpush.msrb.mxu3 %v736_v33  ;;  %v809_v32 = vld [vmem:[#allocation2 + $0x6d8] sm:$0xff]  ;;  %v791_v33 = vld [vmem:[#allocation2 + $0x648] sm:$0xff] }
 0x172   : > { %1421 = vmatpush.msra.mxu0 %v779_v39  ;;  %1940 = vmatpush.msk.msrb.mxu1 %vm832_vm3, %v789_v47  ;;  %v799_v39 = vld [vmem:[#allocation2 + $0x688] sm:$0xff]  ;;  %v806_v47 = vld [vmem:[#allocation2 + $0x6c0] sm:$0xff] }
 0x173   : > { %1276 = vmatpush.msrb.mxu2 %v726_v36  ;;  %1300 = vmatpush.msrb.mxu3 %v735_v37  ;;  %v790_v36 = vld [vmem:[#allocation2 + $0x640] sm:$0xff]  ;;  %v585_v37 = vrot.slane %v2426_v31, 1 }
 0x174   : > { %1927 = vmatmul.msk.f32.vlgmr.msrb.gmra.mxu2 %vm554_vm5, %v578_v38  ;;  %1422 = vmatpush.msra.mxu0 %v778_v46  ;;  %v808_v38 = vld [vmem:[#allocation2 + $0x6d0] sm:$0xff] }
 0x175   : > { %1934 = vmatpush.msk.msra.mxu2 %vm832_vm3, %v765_v40  ;;  %1301 = vmatpush.msrb.mxu3 %v734_v41  ;;  %v817_v40 = vld [vmem:[#allocation2 + $0x718] sm:$0xff]  ;;  %v828_v46 = vld [vmem:[#allocation2 + $0x770] sm:$0xff] }
 0x176   : > { %1929 = vmatmul.msk.f32.vlgmr.msrb.gmra.mxu3 %vm554_vm5, %v579_v42  ;;  %1931 = vmatmul.msk.f32.vlgmr.msrb.gmra.mxu0 %vm554_vm5, %v580_v50  ;;  %v829_v41 = vld [vmem:[#allocation2 + $0x778] sm:$0x3f]  ;;  %v798_v42 = vld [vmem:[#allocation2 + $0x680] sm:$0xff]  ;;  %v827_v50 = vld [vmem:[#allocation2 + $0x768] sm:$0xff] }
 0x177   : > { %1370 = vmatpush.msra.mxu2 %v764_v44  ;;  %1936 = vmatpush.msk.msra.mxu3 %vm832_vm3, %v773_v45  ;;  %v807_v44 = vld [vmem:[#allocation2 + $0x6c8] sm:$0xff]  ;;  %v816_v45 = vld [vmem:[#allocation2 + $0x710] sm:$0xff] }
 0x178   : > { %1445 = vmatpush.msrb.mxu1 %v788_v51  ;;  %1423 = vmatpush.msra.mxu0 %v777_v55  ;;  %v814_v51 = vld [vmem:[#allocation2 + $0x700] sm:$0xff]  ;;  %v825_v55 = vld [vmem:[#allocation2 + $0x758] sm:$0xff] }
 0x179   : > { %1371 = vmatpush.msra.mxu2 %v763_v48  ;;  %1395 = vmatpush.msra.mxu3 %v772_v49  ;;  %v587_v48 = vrot.slane %v2426_v31, 3  ;;  %v815_v49 = vld [vmem:[#allocation2 + $0x708] sm:$0xff] }
 0x17a   : > { %1446 = vmatpush.msrb.mxu1 %v787_v56  ;;  %1424 = vmatpush.msra.mxu0 %v776_v60  ;;  %v824_v56 = vld [vmem:[#allocation2 + $0x750] sm:$0xff] }
 0x17b   : > { %1372 = vmatpush.msra.mxu2 %v762_v53  ;;  %1396 = vmatpush.msra.mxu3 %v771_v54  ;;  %v588_v53 = vrot.slane %v2426_v31, 4  ;;  %v826_v54 = vld [vmem:[#allocation2 + $0x760] sm:$0xff] }
 0x17c   : > { %1933 = vmatmul.msk.f32.vlgmr.msra.gmra.mxu1 %vm554_vm5, %v581_v59  ;;  %1425 = vmatpush.msra.mxu0 %v775_v63  ;;  %v589_v59 = vrot.slane %v2426_v31, 5 }
 0x17d   : > { %1373 = vmatpush.msra.mxu2 %v761_v57  ;;  %1397 = vmatpush.msra.mxu3 %v770_v58  ;;  %v823_v57 = vld [vmem:[#allocation2 + $0x748] sm:$0xff]  ;;  %v822_v58 = vld [vmem:[#allocation2 + $0x740] sm:$0xff] }
 0x17e   : > { %1447 = vmatpush.msrb.mxu1 %v786_v0  ;;  %1426 = vmatpush.msra.mxu0 %v774_v3 }
 0x17f   : > { %1374 = vmatpush.msra.mxu2 %v760_v61  ;;  %1398 = vmatpush.msra.mxu3 %v769_v62 }
 0x180   : > { %1448 = vmatpush.msrb.mxu1 %v785_v4  ;;  %1939 = vmatmul.msk.f32.vlgmr.msra.gmra.mxu0 %vm554_vm5, %v584_v8 }
 0x181   : > { %1375 = vmatpush.msra.mxu2 %v759_v1  ;;  %1399 = vmatpush.msra.mxu3 %v768_v2 }
 0x182   : > { %1449 = vmatpush.msrb.mxu1 %v784_v11  ;;  %1946 = vmatpush.msk.msrb.mxu0 %vm832_vm3, %v813_v16 }
 0x183   : > { %1376 = vmatpush.msra.mxu2 %v758_v5  ;;  %1400 = vmatpush.msra.mxu3 %v767_v6 }
 0x184   : > { %1935 = vmatmul.msk.f32.vlgmr.msra.gmra.mxu2 %vm554_vm5, %v582_v7  ;;  %1450 = vmatpush.msrb.mxu1 %v783_v15 }
 0x185   : > { %1942 = vmatpush.msk.msrb.mxu2 %vm832_vm3, %v797_v9  ;;  %1401 = vmatpush.msra.mxu3 %v766_v10 }
 0x186   : > { %1937 = vmatmul.msk.f32.vlgmr.msra.gmra.mxu3 %vm554_vm5, %v583_v12  ;;  %1451 = vmatpush.msrb.mxu1 %v782_v18 }
 0x187   : > { %1470 = vmatpush.msrb.mxu2 %v796_v13  ;;  %1944 = vmatpush.msk.msrb.mxu3 %vm832_vm3, %v805_v14 }
 0x188   : > { %1520 = vmatpush.msrb.mxu0 %v812_v19  ;;  %1948 = vmatpush.msk.msra.mxu1 %vm832_vm3, %v821_v21 }
 0x189   : > { %1471 = vmatpush.msrb.mxu2 %v795_v17  ;;  %1495 = vmatpush.msrb.mxu3 %v804_v52 }
 0x18a   : > { %1521 = vmatpush.msrb.mxu0 %v811_v22  ;;  %1545 = vmatpush.msra.mxu1 %v820_v25 }
 0x18b   : > { %1472 = vmatpush.msrb.mxu2 %v794_v20  ;;  %1496 = vmatpush.msrb.mxu3 %v803_v27 }
 0x18c   : > { %1522 = vmatpush.msrb.mxu0 %v810_v26  ;;  %1546 = vmatpush.msra.mxu1 %v819_v30 }
 0x18d   : > { %1473 = vmatpush.msrb.mxu2 %v793_v23  ;;  %1497 = vmatpush.msrb.mxu3 %v802_v24 }
 0x18e   : > { %1523 = vmatpush.msrb.mxu0 %v809_v32  ;;  %1941 = vmatmul.msk.f32.vlgmr.msrb.gmra.mxu1 %vm554_vm5, %v2426_v31 }
 0x18f   : > { %1474 = vmatpush.msrb.mxu2 %v792_v28  ;;  %1498 = vmatpush.msrb.mxu3 %v801_v29 }
 0x190   : > { %1547 = vmatpush.msra.mxu1 %v818_v35  ;;  %1524 = vmatpush.msrb.mxu0 %v808_v38 }
 0x191   : > { %1475 = vmatpush.msrb.mxu2 %v791_v33  ;;  %1499 = vmatpush.msrb.mxu3 %v800_v34 }
 0x192   : > { %1548 = vmatpush.msra.mxu1 %v817_v40  ;;  %1525 = vmatpush.msrb.mxu0 %v807_v44 }
 0x193   : > { %1476 = vmatpush.msrb.mxu2 %v790_v36  ;;  %1500 = vmatpush.msrb.mxu3 %v799_v39 }
 0x194   : > { %1943 = vmatmul.msk.f32.vlgmr.msrb.gmra.mxu2 %vm554_vm5, %v585_v37  ;;  %1549 = vmatpush.msra.mxu1 %v816_v45 }
 0x195   : > { %1950 = vmatpush.msk.msra.mxu2 %vm832_vm3, %v829_v41  ;;  %1501 = vmatpush.msrb.mxu3 %v798_v42 }
 0x196   : > { %1945 = vmatmul.msk.f32.vlgmr.msrb.gmra.mxu3 %vm554_vm5, %v586_v43  ;;  %1526 = vmatpush.msrb.mxu0 %v806_v47 }
 0x197   : > { %1570 = vmatpush.msra.mxu2 %v828_v46  ;;  %1550 = vmatpush.msra.mxu1 %v815_v49  ;;  %v1687_v49 = vld [vmem:[%s2611_s7 + $0x30] sm:$0xff] }
 0x198   : > { %1947 = vmatmul.msk.f32.vlgmr.msrb.gmra.mxu0 %vm554_vm5, %v587_v48  ;;  %v1688_v48 = vld [vmem:[%s2611_s7 + $0x38] sm:$0xff] }
 0x199   : > { %1571 = vmatpush.msra.mxu2 %v827_v50  ;;  %1551 = vmatpush.msra.mxu1 %v814_v51  ;;  %v1653_v50 = vld [vmem:[%s2609_s5 + $0x38] sm:$0xff]  ;;  %v1652_v51 = vld [vmem:[%s2609_s5 + $0x30] sm:$0xff] }
 0x19a   : > { %1949 = vmatmul.msk.f32.vlgmr.msra.gmra.mxu1 %vm554_vm5, %v588_v53  ;;  %1701 = vmatpush.msra.mxu0 %v1688_v48 }
 0x19b   : > { %1572 = vmatpush.msra.mxu2 %v826_v54  ;;  %1667 = vmatpush.msra.mxu3 %v1653_v50  ;;  %v1686_v54 = vld [vmem:[%s2611_s7 + $0x28] sm:$0xff] }
 0x19c   : > { %1702 = vmatpush.msra.mxu0 %v1687_v49 }
 0x19d   : > { %1573 = vmatpush.msra.mxu2 %v825_v55  ;;  %v1651_v55 = vld [vmem:[%s2609_s5 + $0x28] sm:$0xff]  ;;  %1668 = vmatpush.msra.mxu3 %v1652_v51 }
 0x19e   : > { %1703 = vmatpush.msra.mxu0 %v1686_v54 }
 0x19f   : > { %1574 = vmatpush.msra.mxu2 %v824_v56  ;;  %1669 = vmatpush.msra.mxu3 %v1651_v55 }
 0x1a1   : > { %1575 = vmatpush.msra.mxu2 %v823_v57  ;;  %v1685_v57 = vld [vmem:[%s2611_s7 + $0x20] sm:$0xff] }
 0x1a2   : > { %1704 = vmatpush.msra.mxu0 %v1685_v57 }
 0x1a3   : > { %1576 = vmatpush.msra.mxu2 %v822_v58 }
 0x1a4   : > { %1951 = vmatmul.msk.f32.vlgmr.msra.gmra.mxu2 %vm554_vm5, %v589_v59 }
 0x1b3   : > { %v953_v6 = vpop.f32.mrf.mxu0 }
 0x1b4   : > { %v1589_v8 = vsel %vm1581_vm7, %v953_v6, 0.0 }
 0x1b7   : > { %v853_v60 = vpop.f32.mrf.mxu2 }
 0x1b8   : > { %v1582_v0 = vsel %vm1581_vm7, %v853_v60, 0.0  ;;  %v1684_v60 = vld [vmem:[%s2611_s7 + $0x18] sm:$0xff] }
 0x1b9   : > { %v878_v61 = vpop.f32.mrf.mxu3  ;;  %1705 = vmatpush.msra.mxu0 %v1684_v60 }
 0x1ba   : > { %v1583_v63 = vsel %vm1581_vm7, %v878_v61, 0.0 }
 0x1bb   : > { %v1584_v2 = vadd.f32 %v1583_v63, %v1582_v0  ;;  %v1028_v14 = vpop.f32.mrf.mxu0  ;;  %v1650_v63 = vld [vmem:[%s2609_s5 + $0x20] sm:$0xff] }
 0x1bc   : > { %v1595_v17 = vsel %vm1581_vm7, %v1028_v14, 0.0  ;;  %1670 = vmatpush.msra.mxu3 %v1650_v63 }
 0x1bd   : > { %v1053_v16 = vpop.f32.mrf.mxu1 }
 0x1be   : > { %v1597_v19 = vsel %vm1581_vm7, %v1053_v16, 0.0 }
 0x1bf   : > { %v903_v62 = vpop.f32.mrf.mxu2 }
 0x1c0   : > { %v1585_v1 = vsel %vm1581_vm7, %v903_v62, 0.0 }
 0x1c1   : > { %v928_v3 = vpop.f32.mrf.mxu3  ;;  %v1586_v4 = vadd.f32 %v1585_v1, %v1584_v2  ;;  %v1683_v2 = vld [vmem:[%s2611_s7 + $0x10] sm:$0xff] }
 0x1c2   : > { %v1587_v5 = vsel %vm1581_vm7, %v928_v3, 0.0  ;;  %1706 = vmatpush.msra.mxu0 %v1683_v2 }
 0x1c3   : > { %v1588_v31 = vadd.f32 %v1587_v5, %v1586_v4  ;;  %v1649_v4 = vld [vmem:[%s2609_s5 + $0x18] sm:$0xff]  ;;  %v1682_v5 = vld [vmem:[%s2611_s7 + $0x8] sm:$0xff] }
 0x1c4   : > { %1671 = vmatpush.msra.mxu3 %v1649_v4  ;;  %1707 = vmatpush.msra.mxu0 %v1682_v5 }
 0x1c5   : > { %v1590_v10 = vadd.f32 %v1589_v8, %v1588_v31  ;;  %v1648_v31 = vld [vmem:[%s2609_s5 + $0x10] sm:$0xff] }
 0x1c6   : > { %1672 = vmatpush.msra.mxu3 %v1648_v31 }
 0x1c7   : > { %v978_v7 = vpop.f32.mrf.mxu2 }
 0x1c8   : > { %v1591_v9 = vsel %vm1581_vm7, %v978_v7, 0.0 }
 0x1c9   : > { %v1003_v11 = vpop.f32.mrf.mxu3  ;;  %v1592_v12 = vadd.f32 %v1591_v9, %v1590_v10  ;;  %v1153_v28 = vpop.f32.mrf.mxu1  ;;  %v1681_v9 = vld [vmem:[%s2611_s7] sm:$0xff]  ;;  %v1647_v10 = vld [vmem:[%s2609_s5 + $0x8] sm:$0xff] }
 0x1ca   : > { %v1593_v13 = vsel %vm1581_vm7, %v1003_v11, 0.0  ;;  %v1605_v32 = vsel %vm1581_vm7, %v1153_v28, 0.0  ;;  %1708 = vmatpush.msra.mxu0 %v1681_v9  ;;  %1673 = vmatpush.msra.mxu3 %v1647_v10 }
 0x1cb   : > { %v1594_v15 = vadd.f32 %v1593_v13, %v1592_v12  ;;  %v1646_v12 = vld [vmem:[%s2609_s5] sm:$0xff] }
 0x1cc   : > { %1674 = vmatpush.msra.mxu3 %v1646_v12 }
 0x1cd   : > { %v1596_v52 = vadd.f32 %v1595_v17, %v1594_v15 }
 0x1cf   : > { %v1598_v27 = vadd.f32 %v1597_v19, %v1596_v52  ;;  %v1128_v24 = vpop.f32.mrf.mxu0 }
 0x1d0   : > { %v1603_v26 = vsel %vm1581_vm7, %v1128_v24, 0.0 }
 0x1d7   : > { %v1078_v18 = vpop.f32.mrf.mxu2 }
 0x1d8   : > { %v1599_v20 = vsel %vm1581_vm7, %v1078_v18, 0.0 }
 0x1d9   : > { %v1103_v21 = vpop.f32.mrf.mxu3  ;;  %v1600_v22 = vadd.f32 %v1599_v20, %v1598_v27  ;;  %v1228_v38 = vpop.f32.mrf.mxu0 }
 0x1da   : > { %v1601_v23 = vsel %vm1581_vm7, %v1103_v21, 0.0  ;;  %v1611_v41 = vsel %vm1581_vm7, %v1228_v38, 0.0 }
 0x1db   : > { %v1602_v25 = vadd.f32 %v1601_v23, %v1600_v22 }
 0x1dd   : > { %v1604_v29 = vadd.f32 %v1603_v26, %v1602_v25 }
 0x1df   : > { %v1606_v34 = vadd.f32 %v1605_v32, %v1604_v29  ;;  %v1253_v40 = vpop.f32.mrf.mxu1 }
 0x1e0   : > { %v1613_v44 = vsel %vm1581_vm7, %v1253_v40, 0.0  ;;  %v1689_v40 = vld [vmem:[%s2612_s8] sm:$0x1] }
 0x1e7   : > { %v1178_v30 = vpop.f32.mrf.mxu2 }
 0x1e8   : > { %v1607_v33 = vsel %vm1581_vm7, %v1178_v30, 0.0 }
 0x1e9   : > { %v1203_v35 = vpop.f32.mrf.mxu3  ;;  %v1608_v36 = vadd.f32 %v1607_v33, %v1606_v34 }
 0x1ea   : > { %v1609_v37 = vsel %vm1581_vm7, %v1203_v35, 0.0  ;;  %v1641_v35 = vld [vmem:[%s2627_s4] sm:$0x1] }
 0x1eb   : > { %v1610_v39 = vadd.f32 %v1609_v37, %v1608_v36 }
 0x1ed   : > { %v1612_v42 = vadd.f32 %v1611_v41, %v1610_v39 }
 0x1ef   : > { %v1614_v46 = vadd.f32 %v1613_v44, %v1612_v42 }
 0x1f3   : > { %v1328_v58 = vpop.f32.mrf.mxu0 }
 0x1f4   : > { %v1619_v61 = vsel %vm1581_vm7, %v1328_v58, 0.0 }
 0x1f7   : > { %v1278_v43 = vpop.f32.mrf.mxu2 }
 0x1f8   : > { %v1615_v45 = vsel %vm1581_vm7, %v1278_v43, 0.0 }
 0x1f9   : > { %v1303_v47 = vpop.f32.mrf.mxu3  ;;  %v1616_v53 = vadd.f32 %v1615_v45, %v1614_v46  ;;  %v1353_v62 = vpop.f32.mrf.mxu1 }
 0x1fa   : > { %v1617_v56 = vsel %vm1581_vm7, %v1303_v47, 0.0  ;;  %v1621_v3 = vsel %vm1581_vm7, %v1353_v62, 0.0 }
 0x1fb   : > { %v1618_v59 = vadd.f32 %v1617_v56, %v1616_v53 }
 0x1fd   : > { %v1620_v0 = vadd.f32 %v1619_v61, %v1618_v59  ;;  %v1428_v14 = vpop.f32.mrf.mxu0 }
 0x1fe   : > { %v1627_v17 = vsel %vm1581_vm7, %v1428_v14, 0.0 }
 0x1ff   : > { %v1622_v7 = vadd.f32 %v1621_v3, %v1620_v0 }
 0x207   : > { %v1378_v1 = vpop.f32.mrf.mxu2 }
 0x208   : > { %v1623_v6 = vsel %vm1581_vm7, %v1378_v1, 0.0 }
 0x209   : > { %v1403_v8 = vpop.f32.mrf.mxu3  ;;  %v1624_v11 = vadd.f32 %v1623_v6, %v1622_v7 }
 0x20a   : > { %v1625_v13 = vsel %vm1581_vm7, %v1403_v8, 0.0 }
 0x20b   : > { %v1626_v15 = vadd.f32 %v1625_v13, %v1624_v11  ;;  %v1453_v16 = vpop.f32.mrf.mxu1 }
 0x20c   : > { %v1629_v18 = vsel %vm1581_vm7, %v1453_v16, 0.0 }
 0x20d   : > { %v1628_v52 = vadd.f32 %v1627_v17, %v1626_v15 }
 0x20f   : > { %v1630_v27 = vadd.f32 %v1629_v18, %v1628_v52 }
 0x215   : > { %v1528_v24 = vpop.f32.mrf.mxu0 }
 0x216   : > { %v1635_v26 = vsel %vm1581_vm7, %v1528_v24, 0.0 }
 0x217   : > { %v1478_v19 = vpop.f32.mrf.mxu2  ;;  %v1553_v28 = vpop.f32.mrf.mxu1 }
 0x218   : > { %v1631_v20 = vsel %vm1581_vm7, %v1478_v19, 0.0  ;;  %v1637_v30 = vsel %vm1581_vm7, %v1553_v28, 0.0 }
 0x219   : > { %v1503_v21 = vpop.f32.mrf.mxu3  ;;  %v1632_v22 = vadd.f32 %v1631_v20, %v1630_v27 }
 0x21a   : > { %v1633_v23 = vsel %vm1581_vm7, %v1503_v21, 0.0 }
 0x21b   : > { %v1634_v25 = vadd.f32 %v1633_v23, %v1632_v22 }
 0x21d   : > { %v1636_v29 = vadd.f32 %v1635_v26, %v1634_v25 }
 0x21f   : > { %v1638_v33 = vadd.f32 %v1637_v30, %v1636_v29 }
 0x227   : > { %v1578_v32 = vpop.f32.mrf.mxu2 }
 0x228   : > { %v1639_v34 = vsel %vm1581_vm7, %v1578_v32, 0.0 }
 0x229   : > { %v1640_v36 = vadd.f32 %v1639_v34, %v1638_v33 }
 0x22b   : > { %v1642_v37 = vadd.f32 %v1641_v35, %v1640_v36 }
 0x22d   : > { %1953 = vmatmul.msk.f32.vlgmr.msra.gmra.mxu0 %vm1655_vm8, %v1642_v37  ;;  %vm1643_vm9 = vcmp.ge.f32.partialorder %v1642_v37, 0.0  ;;  %v1644_v38 = vmul.f32 0.01, %v1642_v37 }
 0x22f   : > { %v1645_v39 = vsel %vm1643_vm9, %v1642_v37, %v1644_v38 }
 0x230   : > { %1952 = vmatmul.msk.f32.vlgmr.msra.gmra.mxu3 %vm1655_vm8, %v1645_v39 }
 0x2aa   : > { %v1710_v41 = vpop.f32.mrf.mxu0 }
 0x2ab   : > { %v1711_v42 = vadd.f32 %v1710_v41, %v1689_v40 }
 0x2ad   : > { %1714 = vst.msk [vmem:[%s406_s12] sm:$0x1] %vm1713_vm10, %v1711_v42 }
 0x2ae   : > { %2080 = shalt.err (!%p2077_p8)
}
 0x2af   : > { %1962 = dma.vmem_to_hbm [thread:$0]  (%p2254_p5), %s1739_s13, 16, %s1741_s3, %s1721_s24   ;;  %v1654_v43 = vld [vmem:[%s2610_s6] sm:$0x1]  ;;  %vm1679_vm11 = vcmask 122880  }
 0x2b0   : > { %s412_s14 = scalar_lea.vmem [#allocation6], %s2547_s15  ;;  %s1753_s29 = sshll.u32 %s1749_s16, 4  ;;  %s1754_s29 = int_to_ptr.hbm [resolvable:$true] %s1753_s29 }
 0x2b1   : > { %s1751_s22 = sshll.u32 %s412_s14, 4  ;;  %s1725_s0 = scalar_lea.sflag [#allocation7], %s2547_s15  ;;  %s1752_s22 = int_to_ptr.vmem [resolvable:$true] %s1751_s22 }
 0x2b2   : > { %s2095_s1 = sshra.s32 %s1754_s29, 4  ;;  %s2101_s3 = scalar_lea.hbm %s2615_s11, 2  ;;  %s2096_s1 = int_to_ptr.hbm [resolvable:$true] %s2095_s1 }
 0x2b3   : > { %v1676_v44 = vpop.f32.mrf.mxu3  ;;  %s2097_s2 = scalar_lea.hbm %s2096_s1, 1  ;;  %p2102_p12 = scmp.lt.s32.totalorder %s2096_s1, %s2615_s11 }
 0x2b4   : > { %v1677_v45 = vadd.f32 %v1676_v44, %v1654_v43  ;;  %p2098_p9 = scmp.ne.s32.totalorder %s2096_s1, %s2097_s2  ;;  %p2103_p13 = scmp.lt.s32.totalorder %s2101_s3, %s2097_s2 }
 0x2b6   : > { %1680 = vst.msk [vmem:[%s412_s14] sm:$0x1] %vm1679_vm11, %v1677_v45  ;;  %p2099_p10 = pnand %p2098_p9, %p2254_p5  ;;  %p2104_p0 = por %p2103_p13, %p2102_p12 }
 0x2b8   : > { %p2100_p11 = pneg %p2099_p10 }
 0x2ba   : > { %p2105_p1 = pnand %p2104_p0, %p2100_p11 }
 0x2bc   : > { %2108 = shalt.err (!%p2105_p1)
}
 0x2bd   : > { %1963 = dma.vmem_to_hbm [thread:$0]  (%p2254_p5), %s1752_s22, 16, %s1754_s29, %s1725_s0  }
 0x2be PF: > { %p1979_p2 = scmp.ge.s32.totalorder %s2151_s20, 2  ;;  %s1773_s15 = sand.u32 1, %s2139_s17  }
 0x2bf   : > { %s1774_s25 = scalar_lea.sflag [#allocation4], %s1773_s15 }
 0x2c0   : > { %p1971_p3 = pnand %p1979_p2, %p2258_p6 }
 0x2c2   : > { %p1972_p4 = pneg %p1971_p3 }
 0x2c4   : > { %2130 = dma.done.wait (%p1972_p4), %s1774_s25, 16  }
 0x2c5   : > { %2132 = vsyncadd (%p1972_p4), %s1774_s25, 4294967280  ;;  %s1783_s30 = scalar_lea.sflag [#allocation7], %s1773_s15 }
 0x2c6   : > { %2134 = dma.done.wait (%p1972_p4), %s1783_s30, 16  }
 0x2c7   : > { %2136 = vsyncadd (%p1972_p4), %s1783_s30, 4294967280  ;;  %p26_p5 = scmp.ge.s32.totalorder %s2241_s23, 4   ;;  %s2628_s17 = smov %s2143_s18 }
 0x2c8   : > { %s2629_s18 = smov %s2147_s19  ;;  %s2630_s19 = smov %s2252_s26 }
 0x2c9   : > { %s2631_s20 = smov %s2241_s23  ;;  %28 = sbr.rel (!%p26_p5) target bundleno = 12 (0xc), region = 125 }
 0x2ce   :  { %1788 = vsyncpa [#allocation3], 1 }
 0x2cf   :  { %1790 = vsyncpa [#allocation3 + $0x1], 1 }
 0x2d0   :  { %1791 = vsyncpa [#allocation4], 1 }
 0x2d1   :  { %1793 = vsyncpa [#allocation4 + $0x1], 1 }
 0x2d2   :  { %1794 = vsyncpa [#allocation7], 1 }
 0x2d3   :  { %1796 = vsyncpa [#allocation7 + $0x1], 1 }

</bundles_post_ra>
